<compile_context>
chip_gen: v7x
topology: tpu7x:2x2x1
jax: 0.10.0
libtpu: 0.0.40
codegen_flags: <defaults>
</compile_context>

<pallas_src>
import functools
import math

import jax
import jax.numpy as jnp
import numpy as np
from jax import lax
from jax.experimental import pallas as pl
from jax.experimental.pallas import tpu as pltpu


def _disc_kernel(x_ref, h_ref,
                 wihx_f_ref, wihh_f_ref, bias_f_ref, bhn_f_ref, whh_f_ref,
                 wihx_b_ref, wihh_b_ref, bias_b_ref, bhn_b_ref, whh_b_ref,
                 wout_f_ref, wout_b_ref, bout_ref,
                 out_ref,
                 gif, gib, hf_buf, hb_buf,
                 *, T, Bp):
    dm = whh_f_ref.shape[0]

    # ---- Hoisted input projections (one pass over all timesteps) ------------
    # gi = x @ wih_x + h @ wih_h + (bih + [bhh_r, bhh_z, 0]); written directly
    # into per-direction scratch -> no gate-split copies, no concat temporary.
    x = x_ref[...]
    h = h_ref[...]
    gif[...] = (jnp.dot(x, wihx_f_ref[...], preferred_element_type=jnp.float32)
                + jnp.dot(h, wihh_f_ref[...], preferred_element_type=jnp.float32)
                + bias_f_ref[...])
    gib[...] = (jnp.dot(x, wihx_b_ref[...], preferred_element_type=jnp.float32)
                + jnp.dot(h, wihh_b_ref[...], preferred_element_type=jnp.float32)
                + bias_b_ref[...])

    whh_f = whh_f_ref[...]
    whh_b = whh_b_ref[...]
    # Hoisted bias broadcasts (JAX does not CSE broadcast_in_dim inside loops).
    # bhn_* is (1, 3*dm) with bhh_n in the n-gate lanes and zeros elsewhere, so
    # it can be fused into the single recurrent matmul result.
    bhn_f = jnp.broadcast_to(bhn_f_ref[...], (Bp, 3 * dm))
    bhn_b = jnp.broadcast_to(bhn_b_ref[...], (Bp, 3 * dm))

    def gru_step(gi, hprev, whh, bhn):
        # PyTorch GRU gate order (r, z, n); ONE recurrent matmul per step.
        gh = jnp.dot(hprev, whh, preferred_element_type=jnp.float32) + bhn
        rz = jax.nn.sigmoid(gi[:, :2 * dm] + gh[:, :2 * dm])
        r = rz[:, :dm]
        z = rz[:, dm:]
        n = jnp.tanh(gi[:, 2 * dm:] + r * gh[:, 2 * dm:])
        return (1.0 - z) * n + z * hprev

    def step(s, carry):
        h_f, h_b = carry
        rf = s * Bp                     # forward direction processes t = s
        rb = (T - 1 - s) * Bp           # backward direction processes t = T-1-s
        if not isinstance(rf, int):     # dynamic loop index -> alignment hints
            rf = pl.multiple_of(rf, Bp)
            rb = pl.multiple_of(rb, Bp)
        # The two directions are independent -> ILP hides per-step latency.
        h_f = gru_step(gif[pl.ds(rf, Bp), :], h_f, whh_f, bhn_f)
        h_b = gru_step(gib[pl.ds(rb, Bp), :], h_b, whh_b, bhn_b)
        hf_buf[pl.ds(rf, Bp), :] = h_f
        hb_buf[pl.ds(rb, Bp), :] = h_b
        return (h_f, h_b)

    h0 = jnp.zeros((Bp, dm), jnp.float32)
    if T <= 32:
        # Small fixed T: fully unrolled straight-line recurrence, hidden state
        # carried purely in vregs.
        carry = (h0, h0)
        for s in range(T):
            carry = step(s, carry)
    else:
        lax.fori_loop(0, T, step, (h0, h0), unroll=8)

    # ---- Single batched, lane-dense read-out (Linear layer) -----------------
    # wout_*/bout are zero-padded to 128 output lanes -> unmasked full stores.
    out_ref[...] = (
        jnp.dot(hf_buf[...], wout_f_ref[...], preferred_element_type=jnp.float32)
        + jnp.dot(hb_buf[...], wout_b_ref[...], preferred_element_type=jnp.float32)
        + bout_ref[...])


def init_params(key, d_in, d_model):
    """Deterministic params matching nn.GRU / nn.Linear shapes (stored transposed)."""
    kgru = 1.0 / math.sqrt(d_model)
    klin = 1.0 / math.sqrt(2 * d_model)
    ks = jax.random.split(key, 10)

    def u(k, shape, scale):
        return jax.random.uniform(k, shape, jnp.float32, minval=-scale, maxval=scale)

    return dict(
        wih_f=u(ks[0], (2 * d_in, 3 * d_model), kgru),   # weight_ih_l0.T
        whh_f=u(ks[1], (d_model, 3 * d_model), kgru),    # weight_hh_l0.T
        bih_f=u(ks[2], (1, 3 * d_model), kgru),
        bhh_f=u(ks[3], (1, 3 * d_model), kgru),
        wih_b=u(ks[4], (2 * d_in, 3 * d_model), kgru),   # *_reverse
        whh_b=u(ks[5], (d_model, 3 * d_model), kgru),
        bih_b=u(ks[6], (1, 3 * d_model), kgru),
        bhh_b=u(ks[7], (1, 3 * d_model), kgru),
        w_out=u(ks[8], (2 * d_model, d_in), klin),       # read_out.weight.T
        b_out=u(ks[9], (1, d_in), klin),
    )


def _vmem_capacity_bytes():
    try:
        return int(pltpu.get_tpu_info().vmem_capacity_bytes)
    except Exception:
        return 64 * 2**20        # conservative (v7x per-TC) fallback


def discriminator_forward(params, x, h):
    squeeze4 = (x.ndim == 4)
    if squeeze4:
        x = x[..., 0]
        h = h[..., 0]
    B, T, d_in = x.shape
    dm = params["whh_f"].shape[0]
    Bp = ((B + 7) // 8) * 8             # pad batch to a full sublane tile
    rows = T * Bp
    n_out = 128 * ((d_in + 127) // 128)  # lane-dense read-out width

    def to_flat(a):                      # (B,T,d) -> time-major padded (T*Bp, d)
        a = jnp.transpose(a, (1, 0, 2)).astype(jnp.float32)
        if Bp != B:
            a = jnp.pad(a, ((0, 0), (0, Bp - B), (0, 0)))
        return a.reshape(rows, d_in)

    x_flat = to_flat(x)                  # x and h passed separately: no HBM
    h_flat = to_flat(h)                  # materialization of cat([x,h]).

    # Split wih into its x-rows and h-rows (avoids in-kernel lane concat);
    # fuse gate biases: r/z get bih+bhh, n keeps bhh_n separate (inside r*(.)).
    def prep_dir(wih, bih, bhh):
        wih_x = wih[:d_in, :]
        wih_h = wih[d_in:, :]
        zero = jnp.zeros((1, dm), jnp.float32)
        bias = bih + jnp.concatenate([bhh[:, :2 * dm], zero], axis=1)
        bhn = jnp.concatenate([zero, zero, bhh[:, 2 * dm:]], axis=1)
        return wih_x, wih_h, bias, bhn

    wihx_f, wihh_f, bias_f, bhn_f = prep_dir(params["wih_f"], params["bih_f"], params["bhh_f"])
    wihx_b, wihh_b, bias_b, bhn_b = prep_dir(params["wih_b"], params["bih_b"], params["bhh_b"])

    # Read-out weights/bias zero-padded to 128 output lanes (lane-dense stores).
    pad = ((0, 0), (0, n_out - d_in))
    wout_f = jnp.pad(params["w_out"][:dm, :], pad)
    wout_b = jnp.pad(params["w_out"][dm:, :], pad)
    bout = jnp.pad(params["b_out"], pad)

    # Explicit VMEM byte estimate (inputs, scratch, dot temporaries, weights).
    need = 4 * (2 * rows * d_in                      # x_flat, h_flat
                + 2 * rows * 3 * dm                  # gif, gib scratch
                + 2 * rows * 3 * dm                  # projection dot temporaries
                + 2 * rows * dm                      # hf_buf, hb_buf
                + 2 * rows * n_out                   # out tile + read-out temp
                + 4 * d_in * 3 * dm                  # wih splits (x/h, fwd/bwd)
                + 2 * dm * 3 * dm                    # whh fwd/bwd
                + 4 * 3 * dm                         # fused gate biases
                + 2 * dm * n_out + n_out)            # padded read-out
    cap = (3 * _vmem_capacity_bytes()) // 4          # leave compiler headroom
    vmem_limit = int(min(cap, max(2 * need, 32 * 2**20)))

    vmem = pl.BlockSpec(memory_space=pltpu.MemorySpace.VMEM)
    kernel = functools.partial(_disc_kernel, T=T, Bp=Bp)
    out_flat = pl.pallas_call(
        kernel,
        out_shape=jax.ShapeDtypeStruct((rows, n_out), jnp.float32),
        in_specs=[vmem] * 15,
        out_specs=vmem,
        scratch_shapes=[pltpu.VMEM((rows, 3 * dm), jnp.float32),   # gif
                        pltpu.VMEM((rows, 3 * dm), jnp.float32),   # gib
                        pltpu.VMEM((rows, dm), jnp.float32),       # hf_buf
                        pltpu.VMEM((rows, dm), jnp.float32)],      # hb_buf
        compiler_params=pltpu.CompilerParams(vmem_limit_bytes=vmem_limit),
    )(x_flat, h_flat,
      wihx_f, wihh_f, bias_f, bhn_f, params["whh_f"],
      wihx_b, wihh_b, bias_b, bhn_b, params["whh_b"],
      wout_f, wout_b, bout)

    logits = out_flat.reshape(T, Bp, n_out)[:, :B, :d_in]   # drop padding
    logits = jnp.transpose(logits, (1, 0, 2))               # (B, T, d_in)
    # nn.Dropout(p=0.0) is the identity -> no-op.
    if squeeze4:
        logits = logits[..., None]                          # (B, T, d_in, 1)
    return logits


def discriminator_ref(params, x, h):
    """Pure-JAX reference (same math as torch nn.GRU + nn.Linear)."""
    if x.ndim == 4:
        x = x[..., 0]
        h = h[..., 0]
    x_in = jnp.concatenate([x, h], axis=-1)
    B, T, _ = x_in.shape
    dm = params["whh_f"].shape[0]

    def cell(xt, hp, wih, whh, bih, bhh):
        gi = xt @ wih + bih
        gh = hp @ whh + bhh
        r = jax.nn.sigmoid(gi[:, :dm] + gh[:, :dm])
        z = jax.nn.sigmoid(gi[:, dm:2 * dm] + gh[:, dm:2 * dm])
        n = jnp.tanh(gi[:, 2 * dm:] + r * gh[:, 2 * dm:])
        return (1.0 - z) * n + z * hp

    hf = jnp.zeros((B, dm), jnp.float32)
    hb = jnp.zeros((B, dm), jnp.float32)
    fwd = []
    bwd = [None] * T
    for t in range(T):
        hf = cell(x_in[:, t], hf, params["wih_f"], params["whh_f"],
                  params["bih_f"], params["bhh_f"])
        fwd.append(hf)
    for t in range(T - 1, -1, -1):
        hb = cell(x_in[:, t], hb, params["wih_b"], params["whh_b"],
                  params["bih_b"], params["bhh_b"])
        bwd[t] = hb
    out = jnp.stack([jnp.concatenate([f, b], axis=-1) for f, b in zip(fwd, bwd)],
                    axis=1)                                       # (B, T, 2*dm)
    logits = out @ params["w_out"] + params["b_out"]
    return logits[..., None]


if __name__ == "__main__":
    d_in, d_model = 4, 32
    B, T = 2, 8
    key = jax.random.PRNGKey(0)
    kp, kx, kh = jax.random.split(key, 3)
    params = init_params(kp, d_in, d_model)
    x = jax.random.normal(kx, (B, T, d_in, 1), jnp.float32)
    h = jax.random.normal(kh, (B, T, d_in, 1), jnp.float32)

    logits = jax.block_until_ready(discriminator_forward(params, x, h))
    assert logits.shape == (B, T, d_in, 1), logits.shape

    ref = discriminator_ref(params, x, h)
    np.testing.assert_allclose(np.asarray(logits), np.asarray(ref),
                               rtol=2e-3, atol=2e-3)
    print("KERNEL_OK")
</pallas_src>

<mosaic_0001>
module attributes {stable_mosaic.version = 11 : i64} {
  func.func @_disc_kernel(%arg0: memref<64x4xf32, #tpu.memory_space<vmem>>, %arg1: memref<64x4xf32, #tpu.memory_space<vmem>>, %arg2: memref<4x96xf32, #tpu.memory_space<vmem>>, %arg3: memref<4x96xf32, #tpu.memory_space<vmem>>, %arg4: memref<1x96xf32, #tpu.memory_space<vmem>>, %arg5: memref<1x96xf32, #tpu.memory_space<vmem>>, %arg6: memref<32x96xf32, #tpu.memory_space<vmem>>, %arg7: memref<4x96xf32, #tpu.memory_space<vmem>>, %arg8: memref<4x96xf32, #tpu.memory_space<vmem>>, %arg9: memref<1x96xf32, #tpu.memory_space<vmem>>, %arg10: memref<1x96xf32, #tpu.memory_space<vmem>>, %arg11: memref<32x96xf32, #tpu.memory_space<vmem>>, %arg12: memref<32x128xf32, #tpu.memory_space<vmem>>, %arg13: memref<32x128xf32, #tpu.memory_space<vmem>>, %arg14: memref<1x128xf32, #tpu.memory_space<vmem>>, %arg15: memref<64x128xf32, #tpu.memory_space<vmem>>, %arg16: memref<64x96xf32, #tpu.memory_space<vmem>>, %arg17: memref<64x96xf32, #tpu.memory_space<vmem>>, %arg18: memref<64x32xf32, #tpu.memory_space<vmem>>, %arg19: memref<64x32xf32, #tpu.memory_space<vmem>>) attributes {dimension_semantics = [], scalar_prefetch = 0 : i64, scratch_operands = 4 : i64, tpu.core_type = #tpu.core_type<tc>} {
    %c0 = arith.constant 0 : index
    %c0_0 = arith.constant 0 : index
    %0 = vector.load %arg0[%c0, %c0_0] : memref<64x4xf32, #tpu.memory_space<vmem>>, vector<64x4xf32>
    %c0_1 = arith.constant 0 : index
    %c0_2 = arith.constant 0 : index
    %1 = vector.load %arg1[%c0_1, %c0_2] : memref<64x4xf32, #tpu.memory_space<vmem>>, vector<64x4xf32>
    %c0_3 = arith.constant 0 : index
    %c0_4 = arith.constant 0 : index
    %2 = vector.load %arg2[%c0_3, %c0_4] : memref<4x96xf32, #tpu.memory_space<vmem>>, vector<4x96xf32>
    %cst = arith.constant dense<0.000000e+00> : vector<64x96xf32>
    %3 = tpu.matmul %0, %2, %cst {dimension_numbers = #tpu.dot_dimension_numbers<[1], [0], [0], [1], [0, 0, 1, 1], [], []>} : vector<64x4xf32>, vector<4x96xf32>, vector<64x96xf32> -> vector<64x96xf32>
    %c0_5 = arith.constant 0 : index
    %c0_6 = arith.constant 0 : index
    %4 = vector.load %arg3[%c0_5, %c0_6] : memref<4x96xf32, #tpu.memory_space<vmem>>, vector<4x96xf32>
    %cst_7 = arith.constant dense<0.000000e+00> : vector<64x96xf32>
    %5 = tpu.matmul %1, %4, %cst_7 {dimension_numbers = #tpu.dot_dimension_numbers<[1], [0], [0], [1], [0, 0, 1, 1], [], []>} : vector<64x4xf32>, vector<4x96xf32>, vector<64x96xf32> -> vector<64x96xf32>
    %6 = arith.addf %3, %5 : vector<64x96xf32>
    %c0_8 = arith.constant 0 : index
    %c0_9 = arith.constant 0 : index
    %7 = vector.load %arg4[%c0_8, %c0_9] : memref<1x96xf32, #tpu.memory_space<vmem>>, vector<1x96xf32>
    %8 = vector.broadcast %7 : vector<1x96xf32> to vector<64x96xf32>
    %9 = arith.addf %6, %8 : vector<64x96xf32>
    %c0_10 = arith.constant 0 : index
    %c0_11 = arith.constant 0 : index
    %10 = vector.load %arg16[%c0_10, %c0_11] : memref<64x96xf32, #tpu.memory_space<vmem>>, vector<64x96xf32>
    tpu.vector_store %arg16[%c0_10, %c0_11], %9 {strides = array<i32>} : memref<64x96xf32, #tpu.memory_space<vmem>>, vector<64x96xf32>,
    %c0_12 = arith.constant 0 : index
    %c0_13 = arith.constant 0 : index
    %11 = vector.load %arg7[%c0_12, %c0_13] : memref<4x96xf32, #tpu.memory_space<vmem>>, vector<4x96xf32>
    %cst_14 = arith.constant dense<0.000000e+00> : vector<64x96xf32>
    %12 = tpu.matmul %0, %11, %cst_14 {dimension_numbers = #tpu.dot_dimension_numbers<[1], [0], [0], [1], [0, 0, 1, 1], [], []>} : vector<64x4xf32>, vector<4x96xf32>, vector<64x96xf32> -> vector<64x96xf32>
    %c0_15 = arith.constant 0 : index
    %c0_16 = arith.constant 0 : index
    %13 = vector.load %arg8[%c0_15, %c0_16] : memref<4x96xf32, #tpu.memory_space<vmem>>, vector<4x96xf32>
    %cst_17 = arith.constant dense<0.000000e+00> : vector<64x96xf32>
    %14 = tpu.matmul %1, %13, %cst_17 {dimension_numbers = #tpu.dot_dimension_numbers<[1], [0], [0], [1], [0, 0, 1, 1], [], []>} : vector<64x4xf32>, vector<4x96xf32>, vector<64x96xf32> -> vector<64x96xf32>
    %15 = arith.addf %12, %14 : vector<64x96xf32>
    %c0_18 = arith.constant 0 : index
    %c0_19 = arith.constant 0 : index
    %16 = vector.load %arg9[%c0_18, %c0_19] : memref<1x96xf32, #tpu.memory_space<vmem>>, vector<1x96xf32>
    %17 = vector.broadcast %16 : vector<1x96xf32> to vector<64x96xf32>
    %18 = arith.addf %15, %17 : vector<64x96xf32>
    %c0_20 = arith.constant 0 : index
    %c0_21 = arith.constant 0 : index
    %19 = vector.load %arg17[%c0_20, %c0_21] : memref<64x96xf32, #tpu.memory_space<vmem>>, vector<64x96xf32>
    tpu.vector_store %arg17[%c0_20, %c0_21], %18 {strides = array<i32>} : memref<64x96xf32, #tpu.memory_space<vmem>>, vector<64x96xf32>,
    %c0_22 = arith.constant 0 : index
    %c0_23 = arith.constant 0 : index
    %20 = vector.load %arg6[%c0_22, %c0_23] : memref<32x96xf32, #tpu.memory_space<vmem>>, vector<32x96xf32>
    %c0_24 = arith.constant 0 : index
    %c0_25 = arith.constant 0 : index
    %21 = vector.load %arg11[%c0_24, %c0_25] : memref<32x96xf32, #tpu.memory_space<vmem>>, vector<32x96xf32>
    %c0_26 = arith.constant 0 : index
    %c0_27 = arith.constant 0 : index
    %22 = vector.load %arg5[%c0_26, %c0_27] : memref<1x96xf32, #tpu.memory_space<vmem>>, vector<1x96xf32>
    %23 = vector.shape_cast %22 : vector<1x96xf32> to vector<1x96xf32>
    %24 = vector.broadcast %23 : vector<1x96xf32> to vector<8x96xf32>
    %c0_28 = arith.constant 0 : index
    %c0_29 = arith.constant 0 : index
    %25 = vector.load %arg10[%c0_28, %c0_29] : memref<1x96xf32, #tpu.memory_space<vmem>>, vector<1x96xf32>
    %26 = vector.shape_cast %25 : vector<1x96xf32> to vector<1x96xf32>
    %27 = vector.broadcast %26 : vector<1x96xf32> to vector<8x96xf32>
    %cst_30 = arith.constant 0.000000e+00 : f32
    %28 = vector.broadcast %cst_30 : f32 to vector<8x32xf32>
    %c0_31 = arith.constant 0 : index
    %c0_32 = arith.constant 0 : index
    %29 = vector.load %arg16[%c0_31, %c0_32] : memref<64x96xf32, #tpu.memory_space<vmem>>, vector<8x96xf32>
    %cst_33 = arith.constant dense<0.000000e+00> : vector<8x96xf32>
    %30 = tpu.matmul %28, %20, %cst_33 {dimension_numbers = #tpu.dot_dimension_numbers<[1], [0], [0], [1], [0, 0, 1, 1], [], []>} : vector<8x32xf32>, vector<32x96xf32>, vector<8x96xf32> -> vector<8x96xf32>
    %31 = arith.addf %30, %24 : vector<8x96xf32>
    %32 = vector.extract_strided_slice %29 {offsets = [0, 0], sizes = [8, 64], strides = [1, 1]} : vector<8x96xf32> to vector<8x64xf32>
    %33 = vector.extract_strided_slice %31 {offsets = [0, 0], sizes = [8, 64], strides = [1, 1]} : vector<8x96xf32> to vector<8x64xf32>
    %34 = arith.addf %32, %33 : vector<8x64xf32>
    %35 = arith.negf %34 : vector<8x64xf32>
    %36 = math.exp %35 : vector<8x64xf32>
    %cst_34 = arith.constant 1.000000e+00 : f32
    %37 = vector.broadcast %cst_34 : f32 to vector<8x64xf32>
    %38 = arith.addf %37, %36 : vector<8x64xf32>
    %39 = arith.divf %37, %38 : vector<8x64xf32>
    %40 = vector.extract_strided_slice %39 {offsets = [0, 0], sizes = [8, 32], strides = [1, 1]} : vector<8x64xf32> to vector<8x32xf32>
    %41 = vector.extract_strided_slice %39 {offsets = [0, 32], sizes = [8, 32], strides = [1, 1]} : vector<8x64xf32> to vector<8x32xf32>
    %42 = vector.extract_strided_slice %29 {offsets = [0, 64], sizes = [8, 32], strides = [1, 1]} : vector<8x96xf32> to vector<8x32xf32>
    %43 = vector.extract_strided_slice %31 {offsets = [0, 64], sizes = [8, 32], strides = [1, 1]} : vector<8x96xf32> to vector<8x32xf32>
    %44 = arith.mulf %40, %43 : vector<8x32xf32>
    %45 = arith.addf %42, %44 : vector<8x32xf32>
    %46 = math.tanh %45 : vector<8x32xf32>
    %cst_35 = arith.constant 1.000000e+00 : f32
    %47 = vector.broadcast %cst_35 : f32 to vector<8x32xf32>
    %48 = arith.subf %47, %41 : vector<8x32xf32>
    %49 = arith.mulf %48, %46 : vector<8x32xf32>
    %50 = arith.mulf %41, %28 : vector<8x32xf32>
    %51 = arith.addf %49, %50 : vector<8x32xf32>
    %c56 = arith.constant 56 : index
    %c0_36 = arith.constant 0 : index
    %52 = vector.load %arg17[%c56, %c0_36] : memref<64x96xf32, #tpu.memory_space<vmem>>, vector<8x96xf32>
    %cst_37 = arith.constant dense<0.000000e+00> : vector<8x96xf32>
    %53 = tpu.matmul %28, %21, %cst_37 {dimension_numbers = #tpu.dot_dimension_numbers<[1], [0], [0], [1], [0, 0, 1, 1], [], []>} : vector<8x32xf32>, vector<32x96xf32>, vector<8x96xf32> -> vector<8x96xf32>
    %54 = arith.addf %53, %27 : vector<8x96xf32>
    %55 = vector.extract_strided_slice %52 {offsets = [0, 0], sizes = [8, 64], strides = [1, 1]} : vector<8x96xf32> to vector<8x64xf32>
    %56 = vector.extract_strided_slice %54 {offsets = [0, 0], sizes = [8, 64], strides = [1, 1]} : vector<8x96xf32> to vector<8x64xf32>
    %57 = arith.addf %55, %56 : vector<8x64xf32>
    %58 = arith.negf %57 : vector<8x64xf32>
    %59 = math.exp %58 : vector<8x64xf32>
    %cst_38 = arith.constant 1.000000e+00 : f32
    %60 = vector.broadcast %cst_38 : f32 to vector<8x64xf32>
    %61 = arith.addf %60, %59 : vector<8x64xf32>
    %62 = arith.divf %60, %61 : vector<8x64xf32>
    %63 = vector.extract_strided_slice %62 {offsets = [0, 0], sizes = [8, 32], strides = [1, 1]} : vector<8x64xf32> to vector<8x32xf32>
    %64 = vector.extract_strided_slice %62 {offsets = [0, 32], sizes = [8, 32], strides = [1, 1]} : vector<8x64xf32> to vector<8x32xf32>
    %65 = vector.extract_strided_slice %52 {offsets = [0, 64], sizes = [8, 32], strides = [1, 1]} : vector<8x96xf32> to vector<8x32xf32>
    %66 = vector.extract_strided_slice %54 {offsets = [0, 64], sizes = [8, 32], strides = [1, 1]} : vector<8x96xf32> to vector<8x32xf32>
    %67 = arith.mulf %63, %66 : vector<8x32xf32>
    %68 = arith.addf %65, %67 : vector<8x32xf32>
    %69 = math.tanh %68 : vector<8x32xf32>
    %cst_39 = arith.constant 1.000000e+00 : f32
    %70 = vector.broadcast %cst_39 : f32 to vector<8x32xf32>
    %71 = arith.subf %70, %64 : vector<8x32xf32>
    %72 = arith.mulf %71, %69 : vector<8x32xf32>
    %73 = arith.mulf %64, %28 : vector<8x32xf32>
    %74 = arith.addf %72, %73 : vector<8x32xf32>
    %c0_40 = arith.constant 0 : index
    %c0_41 = arith.constant 0 : index
    %75 = vector.load %arg18[%c0_40, %c0_41] : memref<64x32xf32, #tpu.memory_space<vmem>>, vector<8x32xf32>
    tpu.vector_store %arg18[%c0_40, %c0_41], %51 {strides = array<i32>} : memref<64x32xf32, #tpu.memory_space<vmem>>, vector<8x32xf32>,
    %c56_42 = arith.constant 56 : index
    %c0_43 = arith.constant 0 : index
    %76 = vector.load %arg19[%c56_42, %c0_43] : memref<64x32xf32, #tpu.memory_space<vmem>>, vector<8x32xf32>
    tpu.vector_store %arg19[%c56_42, %c0_43], %74 {strides = array<i32>} : memref<64x32xf32, #tpu.memory_space<vmem>>, vector<8x32xf32>,
    %c8 = arith.constant 8 : index
    %c0_44 = arith.constant 0 : index
    %77 = vector.load %arg16[%c8, %c0_44] : memref<64x96xf32, #tpu.memory_space<vmem>>, vector<8x96xf32>
    %cst_45 = arith.constant dense<0.000000e+00> : vector<8x96xf32>
    %78 = tpu.matmul %51, %20, %cst_45 {dimension_numbers = #tpu.dot_dimension_numbers<[1], [0], [0], [1], [0, 0, 1, 1], [], []>} : vector<8x32xf32>, vector<32x96xf32>, vector<8x96xf32> -> vector<8x96xf32>
    %79 = arith.addf %78, %24 : vector<8x96xf32>
    %80 = vector.extract_strided_slice %77 {offsets = [0, 0], sizes = [8, 64], strides = [1, 1]} : vector<8x96xf32> to vector<8x64xf32>
    %81 = vector.extract_strided_slice %79 {offsets = [0, 0], sizes = [8, 64], strides = [1, 1]} : vector<8x96xf32> to vector<8x64xf32>
    %82 = arith.addf %80, %81 : vector<8x64xf32>
    %83 = arith.negf %82 : vector<8x64xf32>
    %84 = math.exp %83 : vector<8x64xf32>
    %cst_46 = arith.constant 1.000000e+00 : f32
    %85 = vector.broadcast %cst_46 : f32 to vector<8x64xf32>
    %86 = arith.addf %85, %84 : vector<8x64xf32>
    %87 = arith.divf %85, %86 : vector<8x64xf32>
    %88 = vector.extract_strided_slice %87 {offsets = [0, 0], sizes = [8, 32], strides = [1, 1]} : vector<8x64xf32> to vector<8x32xf32>
    %89 = vector.extract_strided_slice %87 {offsets = [0, 32], sizes = [8, 32], strides = [1, 1]} : vector<8x64xf32> to vector<8x32xf32>
    %90 = vector.extract_strided_slice %77 {offsets = [0, 64], sizes = [8, 32], strides = [1, 1]} : vector<8x96xf32> to vector<8x32xf32>
    %91 = vector.extract_strided_slice %79 {offsets = [0, 64], sizes = [8, 32], strides = [1, 1]} : vector<8x96xf32> to vector<8x32xf32>
    %92 = arith.mulf %88, %91 : vector<8x32xf32>
    %93 = arith.addf %90, %92 : vector<8x32xf32>
    %94 = math.tanh %93 : vector<8x32xf32>
    %cst_47 = arith.constant 1.000000e+00 : f32
    %95 = vector.broadcast %cst_47 : f32 to vector<8x32xf32>
    %96 = arith.subf %95, %89 : vector<8x32xf32>
    %97 = arith.mulf %96, %94 : vector<8x32xf32>
    %98 = arith.mulf %89, %51 : vector<8x32xf32>
    %99 = arith.addf %97, %98 : vector<8x32xf32>
    %c48 = arith.constant 48 : index
    %c0_48 = arith.constant 0 : index
    %100 = vector.load %arg17[%c48, %c0_48] : memref<64x96xf32, #tpu.memory_space<vmem>>, vector<8x96xf32>
    %cst_49 = arith.constant dense<0.000000e+00> : vector<8x96xf32>
    %101 = tpu.matmul %74, %21, %cst_49 {dimension_numbers = #tpu.dot_dimension_numbers<[1], [0], [0], [1], [0, 0, 1, 1], [], []>} : vector<8x32xf32>, vector<32x96xf32>, vector<8x96xf32> -> vector<8x96xf32>
    %102 = arith.addf %101, %27 : vector<8x96xf32>
    %103 = vector.extract_strided_slice %100 {offsets = [0, 0], sizes = [8, 64], strides = [1, 1]} : vector<8x96xf32> to vector<8x64xf32>
    %104 = vector.extract_strided_slice %102 {offsets = [0, 0], sizes = [8, 64], strides = [1, 1]} : vector<8x96xf32> to vector<8x64xf32>
    %105 = arith.addf %103, %104 : vector<8x64xf32>
    %106 = arith.negf %105 : vector<8x64xf32>
    %107 = math.exp %106 : vector<8x64xf32>
    %cst_50 = arith.constant 1.000000e+00 : f32
    %108 = vector.broadcast %cst_50 : f32 to vector<8x64xf32>
    %109 = arith.addf %108, %107 : vector<8x64xf32>
    %110 = arith.divf %108, %109 : vector<8x64xf32>
    %111 = vector.extract_strided_slice %110 {offsets = [0, 0], sizes = [8, 32], strides = [1, 1]} : vector<8x64xf32> to vector<8x32xf32>
    %112 = vector.extract_strided_slice %110 {offsets = [0, 32], sizes = [8, 32], strides = [1, 1]} : vector<8x64xf32> to vector<8x32xf32>
    %113 = vector.extract_strided_slice %100 {offsets = [0, 64], sizes = [8, 32], strides = [1, 1]} : vector<8x96xf32> to vector<8x32xf32>
    %114 = vector.extract_strided_slice %102 {offsets = [0, 64], sizes = [8, 32], strides = [1, 1]} : vector<8x96xf32> to vector<8x32xf32>
    %115 = arith.mulf %111, %114 : vector<8x32xf32>
    %116 = arith.addf %113, %115 : vector<8x32xf32>
    %117 = math.tanh %116 : vector<8x32xf32>
    %cst_51 = arith.constant 1.000000e+00 : f32
    %118 = vector.broadcast %cst_51 : f32 to vector<8x32xf32>
    %119 = arith.subf %118, %112 : vector<8x32xf32>
    %120 = arith.mulf %119, %117 : vector<8x32xf32>
    %121 = arith.mulf %112, %74 : vector<8x32xf32>
    %122 = arith.addf %120, %121 : vector<8x32xf32>
    %c8_52 = arith.constant 8 : index
    %c0_53 = arith.constant 0 : index
    %123 = vector.load %arg18[%c8_52, %c0_53] : memref<64x32xf32, #tpu.memory_space<vmem>>, vector<8x32xf32>
    tpu.vector_store %arg18[%c8_52, %c0_53], %99 {strides = array<i32>} : memref<64x32xf32, #tpu.memory_space<vmem>>, vector<8x32xf32>,
    %c48_54 = arith.constant 48 : index
    %c0_55 = arith.constant 0 : index
    %124 = vector.load %arg19[%c48_54, %c0_55] : memref<64x32xf32, #tpu.memory_space<vmem>>, vector<8x32xf32>
    tpu.vector_store %arg19[%c48_54, %c0_55], %122 {strides = array<i32>} : memref<64x32xf32, #tpu.memory_space<vmem>>, vector<8x32xf32>,
    %c16 = arith.constant 16 : index
    %c0_56 = arith.constant 0 : index
    %125 = vector.load %arg16[%c16, %c0_56] : memref<64x96xf32, #tpu.memory_space<vmem>>, vector<8x96xf32>
    %cst_57 = arith.constant dense<0.000000e+00> : vector<8x96xf32>
    %126 = tpu.matmul %99, %20, %cst_57 {dimension_numbers = #tpu.dot_dimension_numbers<[1], [0], [0], [1], [0, 0, 1, 1], [], []>} : vector<8x32xf32>, vector<32x96xf32>, vector<8x96xf32> -> vector<8x96xf32>
    %127 = arith.addf %126, %24 : vector<8x96xf32>
    %128 = vector.extract_strided_slice %125 {offsets = [0, 0], sizes = [8, 64], strides = [1, 1]} : vector<8x96xf32> to vector<8x64xf32>
    %129 = vector.extract_strided_slice %127 {offsets = [0, 0], sizes = [8, 64], strides = [1, 1]} : vector<8x96xf32> to vector<8x64xf32>
    %130 = arith.addf %128, %129 : vector<8x64xf32>
    %131 = arith.negf %130 : vector<8x64xf32>
    %132 = math.exp %131 : vector<8x64xf32>
    %cst_58 = arith.constant 1.000000e+00 : f32
    %133 = vector.broadcast %cst_58 : f32 to vector<8x64xf32>
    %134 = arith.addf %133, %132 : vector<8x64xf32>
    %135 = arith.divf %133, %134 : vector<8x64xf32>
    %136 = vector.extract_strided_slice %135 {offsets = [0, 0], sizes = [8, 32], strides = [1, 1]} : vector<8x64xf32> to vector<8x32xf32>
    %137 = vector.extract_strided_slice %135 {offsets = [0, 32], sizes = [8, 32], strides = [1, 1]} : vector<8x64xf32> to vector<8x32xf32>
    %138 = vector.extract_strided_slice %125 {offsets = [0, 64], sizes = [8, 32], strides = [1, 1]} : vector<8x96xf32> to vector<8x32xf32>
    %139 = vector.extract_strided_slice %127 {offsets = [0, 64], sizes = [8, 32], strides = [1, 1]} : vector<8x96xf32> to vector<8x32xf32>
    %140 = arith.mulf %136, %139 : vector<8x32xf32>
    %141 = arith.addf %138, %140 : vector<8x32xf32>
    %142 = math.tanh %141 : vector<8x32xf32>
    %cst_59 = arith.constant 1.000000e+00 : f32
    %143 = vector.broadcast %cst_59 : f32 to vector<8x32xf32>
    %144 = arith.subf %143, %137 : vector<8x32xf32>
    %145 = arith.mulf %144, %142 : vector<8x32xf32>
    %146 = arith.mulf %137, %99 : vector<8x32xf32>
    %147 = arith.addf %145, %146 : vector<8x32xf32>
    %c40 = arith.constant 40 : index
    %c0_60 = arith.constant 0 : index
    %148 = vector.load %arg17[%c40, %c0_60] : memref<64x96xf32, #tpu.memory_space<vmem>>, vector<8x96xf32>
    %cst_61 = arith.constant dense<0.000000e+00> : vector<8x96xf32>
    %149 = tpu.matmul %122, %21, %cst_61 {dimension_numbers = #tpu.dot_dimension_numbers<[1], [0], [0], [1], [0, 0, 1, 1], [], []>} : vector<8x32xf32>, vector<32x96xf32>, vector<8x96xf32> -> vector<8x96xf32>
    %150 = arith.addf %149, %27 : vector<8x96xf32>
    %151 = vector.extract_strided_slice %148 {offsets = [0, 0], sizes = [8, 64], strides = [1, 1]} : vector<8x96xf32> to vector<8x64xf32>
    %152 = vector.extract_strided_slice %150 {offsets = [0, 0], sizes = [8, 64], strides = [1, 1]} : vector<8x96xf32> to vector<8x64xf32>
    %153 = arith.addf %151, %152 : vector<8x64xf32>
    %154 = arith.negf %153 : vector<8x64xf32>
    %155 = math.exp %154 : vector<8x64xf32>
    %cst_62 = arith.constant 1.000000e+00 : f32
    %156 = vector.broadcast %cst_62 : f32 to vector<8x64xf32>
    %157 = arith.addf %156, %155 : vector<8x64xf32>
    %158 = arith.divf %156, %157 : vector<8x64xf32>
    %159 = vector.extract_strided_slice %158 {offsets = [0, 0], sizes = [8, 32], strides = [1, 1]} : vector<8x64xf32> to vector<8x32xf32>
    %160 = vector.extract_strided_slice %158 {offsets = [0, 32], sizes = [8, 32], strides = [1, 1]} : vector<8x64xf32> to vector<8x32xf32>
    %161 = vector.extract_strided_slice %148 {offsets = [0, 64], sizes = [8, 32], strides = [1, 1]} : vector<8x96xf32> to vector<8x32xf32>
    %162 = vector.extract_strided_slice %150 {offsets = [0, 64], sizes = [8, 32], strides = [1, 1]} : vector<8x96xf32> to vector<8x32xf32>
    %163 = arith.mulf %159, %162 : vector<8x32xf32>
    %164 = arith.addf %161, %163 : vector<8x32xf32>
    %165 = math.tanh %164 : vector<8x32xf32>
    %cst_63 = arith.constant 1.000000e+00 : f32
    %166 = vector.broadcast %cst_63 : f32 to vector<8x32xf32>
    %167 = arith.subf %166, %160 : vector<8x32xf32>
    %168 = arith.mulf %167, %165 : vector<8x32xf32>
    %169 = arith.mulf %160, %122 : vector<8x32xf32>
    %170 = arith.addf %168, %169 : vector<8x32xf32>
    %c16_64 = arith.constant 16 : index
    %c0_65 = arith.constant 0 : index
    %171 = vector.load %arg18[%c16_64, %c0_65] : memref<64x32xf32, #tpu.memory_space<vmem>>, vector<8x32xf32>
    tpu.vector_store %arg18[%c16_64, %c0_65], %147 {strides = array<i32>} : memref<64x32xf32, #tpu.memory_space<vmem>>, vector<8x32xf32>,
    %c40_66 = arith.constant 40 : index
    %c0_67 = arith.constant 0 : index
    %172 = vector.load %arg19[%c40_66, %c0_67] : memref<64x32xf32, #tpu.memory_space<vmem>>, vector<8x32xf32>
    tpu.vector_store %arg19[%c40_66, %c0_67], %170 {strides = array<i32>} : memref<64x32xf32, #tpu.memory_space<vmem>>, vector<8x32xf32>,
    %c24 = arith.constant 24 : index
    %c0_68 = arith.constant 0 : index
    %173 = vector.load %arg16[%c24, %c0_68] : memref<64x96xf32, #tpu.memory_space<vmem>>, vector<8x96xf32>
    %cst_69 = arith.constant dense<0.000000e+00> : vector<8x96xf32>
    %174 = tpu.matmul %147, %20, %cst_69 {dimension_numbers = #tpu.dot_dimension_numbers<[1], [0], [0], [1], [0, 0, 1, 1], [], []>} : vector<8x32xf32>, vector<32x96xf32>, vector<8x96xf32> -> vector<8x96xf32>
    %175 = arith.addf %174, %24 : vector<8x96xf32>
    %176 = vector.extract_strided_slice %173 {offsets = [0, 0], sizes = [8, 64], strides = [1, 1]} : vector<8x96xf32> to vector<8x64xf32>
    %177 = vector.extract_strided_slice %175 {offsets = [0, 0], sizes = [8, 64], strides = [1, 1]} : vector<8x96xf32> to vector<8x64xf32>
    %178 = arith.addf %176, %177 : vector<8x64xf32>
    %179 = arith.negf %178 : vector<8x64xf32>
    %180 = math.exp %179 : vector<8x64xf32>
    %cst_70 = arith.constant 1.000000e+00 : f32
    %181 = vector.broadcast %cst_70 : f32 to vector<8x64xf32>
    %182 = arith.addf %181, %180 : vector<8x64xf32>
    %183 = arith.divf %181, %182 : vector<8x64xf32>
    %184 = vector.extract_strided_slice %183 {offsets = [0, 0], sizes = [8, 32], strides = [1, 1]} : vector<8x64xf32> to vector<8x32xf32>
    %185 = vector.extract_strided_slice %183 {offsets = [0, 32], sizes = [8, 32], strides = [1, 1]} : vector<8x64xf32> to vector<8x32xf32>
    %186 = vector.extract_strided_slice %173 {offsets = [0, 64], sizes = [8, 32], strides = [1, 1]} : vector<8x96xf32> to vector<8x32xf32>
    %187 = vector.extract_strided_slice %175 {offsets = [0, 64], sizes = [8, 32], strides = [1, 1]} : vector<8x96xf32> to vector<8x32xf32>
    %188 = arith.mulf %184, %187 : vector<8x32xf32>
    %189 = arith.addf %186, %188 : vector<8x32xf32>
    %190 = math.tanh %189 : vector<8x32xf32>
    %cst_71 = arith.constant 1.000000e+00 : f32
    %191 = vector.broadcast %cst_71 : f32 to vector<8x32xf32>
    %192 = arith.subf %191, %185 : vector<8x32xf32>
    %193 = arith.mulf %192, %190 : vector<8x32xf32>
    %194 = arith.mulf %185, %147 : vector<8x32xf32>
    %195 = arith.addf %193, %194 : vector<8x32xf32>
    %c32 = arith.constant 32 : index
    %c0_72 = arith.constant 0 : index
    %196 = vector.load %arg17[%c32, %c0_72] : memref<64x96xf32, #tpu.memory_space<vmem>>, vector<8x96xf32>
    %cst_73 = arith.constant dense<0.000000e+00> : vector<8x96xf32>
    %197 = tpu.matmul %170, %21, %cst_73 {dimension_numbers = #tpu.dot_dimension_numbers<[1], [0], [0], [1], [0, 0, 1, 1], [], []>} : vector<8x32xf32>, vector<32x96xf32>, vector<8x96xf32> -> vector<8x96xf32>
    %198 = arith.addf %197, %27 : vector<8x96xf32>
    %199 = vector.extract_strided_slice %196 {offsets = [0, 0], sizes = [8, 64], strides = [1, 1]} : vector<8x96xf32> to vector<8x64xf32>
    %200 = vector.extract_strided_slice %198 {offsets = [0, 0], sizes = [8, 64], strides = [1, 1]} : vector<8x96xf32> to vector<8x64xf32>
    %201 = arith.addf %199, %200 : vector<8x64xf32>
    %202 = arith.negf %201 : vector<8x64xf32>
    %203 = math.exp %202 : vector<8x64xf32>
    %cst_74 = arith.constant 1.000000e+00 : f32
    %204 = vector.broadcast %cst_74 : f32 to vector<8x64xf32>
    %205 = arith.addf %204, %203 : vector<8x64xf32>
    %206 = arith.divf %204, %205 : vector<8x64xf32>
    %207 = vector.extract_strided_slice %206 {offsets = [0, 0], sizes = [8, 32], strides = [1, 1]} : vector<8x64xf32> to vector<8x32xf32>
    %208 = vector.extract_strided_slice %206 {offsets = [0, 32], sizes = [8, 32], strides = [1, 1]} : vector<8x64xf32> to vector<8x32xf32>
    %209 = vector.extract_strided_slice %196 {offsets = [0, 64], sizes = [8, 32], strides = [1, 1]} : vector<8x96xf32> to vector<8x32xf32>
    %210 = vector.extract_strided_slice %198 {offsets = [0, 64], sizes = [8, 32], strides = [1, 1]} : vector<8x96xf32> to vector<8x32xf32>
    %211 = arith.mulf %207, %210 : vector<8x32xf32>
    %212 = arith.addf %209, %211 : vector<8x32xf32>
    %213 = math.tanh %212 : vector<8x32xf32>
    %cst_75 = arith.constant 1.000000e+00 : f32
    %214 = vector.broadcast %cst_75 : f32 to vector<8x32xf32>
    %215 = arith.subf %214, %208 : vector<8x32xf32>
    %216 = arith.mulf %215, %213 : vector<8x32xf32>
    %217 = arith.mulf %208, %170 : vector<8x32xf32>
    %218 = arith.addf %216, %217 : vector<8x32xf32>
    %c24_76 = arith.constant 24 : index
    %c0_77 = arith.constant 0 : index
    %219 = vector.load %arg18[%c24_76, %c0_77] : memref<64x32xf32, #tpu.memory_space<vmem>>, vector<8x32xf32>
    tpu.vector_store %arg18[%c24_76, %c0_77], %195 {strides = array<i32>} : memref<64x32xf32, #tpu.memory_space<vmem>>, vector<8x32xf32>,
    %c32_78 = arith.constant 32 : index
    %c0_79 = arith.constant 0 : index
    %220 = vector.load %arg19[%c32_78, %c0_79] : memref<64x32xf32, #tpu.memory_space<vmem>>, vector<8x32xf32>
    tpu.vector_store %arg19[%c32_78, %c0_79], %218 {strides = array<i32>} : memref<64x32xf32, #tpu.memory_space<vmem>>, vector<8x32xf32>,
    %c32_80 = arith.constant 32 : index
    %c0_81 = arith.constant 0 : index
    %221 = vector.load %arg16[%c32_80, %c0_81] : memref<64x96xf32, #tpu.memory_space<vmem>>, vector<8x96xf32>
    %cst_82 = arith.constant dense<0.000000e+00> : vector<8x96xf32>
    %222 = tpu.matmul %195, %20, %cst_82 {dimension_numbers = #tpu.dot_dimension_numbers<[1], [0], [0], [1], [0, 0, 1, 1], [], []>} : vector<8x32xf32>, vector<32x96xf32>, vector<8x96xf32> -> vector<8x96xf32>
    %223 = arith.addf %222, %24 : vector<8x96xf32>
    %224 = vector.extract_strided_slice %221 {offsets = [0, 0], sizes = [8, 64], strides = [1, 1]} : vector<8x96xf32> to vector<8x64xf32>
    %225 = vector.extract_strided_slice %223 {offsets = [0, 0], sizes = [8, 64], strides = [1, 1]} : vector<8x96xf32> to vector<8x64xf32>
    %226 = arith.addf %224, %225 : vector<8x64xf32>
    %227 = arith.negf %226 : vector<8x64xf32>
    %228 = math.exp %227 : vector<8x64xf32>
    %cst_83 = arith.constant 1.000000e+00 : f32
    %229 = vector.broadcast %cst_83 : f32 to vector<8x64xf32>
    %230 = arith.addf %229, %228 : vector<8x64xf32>
    %231 = arith.divf %229, %230 : vector<8x64xf32>
    %232 = vector.extract_strided_slice %231 {offsets = [0, 0], sizes = [8, 32], strides = [1, 1]} : vector<8x64xf32> to vector<8x32xf32>
    %233 = vector.extract_strided_slice %231 {offsets = [0, 32], sizes = [8, 32], strides = [1, 1]} : vector<8x64xf32> to vector<8x32xf32>
    %234 = vector.extract_strided_slice %221 {offsets = [0, 64], sizes = [8, 32], strides = [1, 1]} : vector<8x96xf32> to vector<8x32xf32>
    %235 = vector.extract_strided_slice %223 {offsets = [0, 64], sizes = [8, 32], strides = [1, 1]} : vector<8x96xf32> to vector<8x32xf32>
    %236 = arith.mulf %232, %235 : vector<8x32xf32>
    %237 = arith.addf %234, %236 : vector<8x32xf32>
    %238 = math.tanh %237 : vector<8x32xf32>
    %cst_84 = arith.constant 1.000000e+00 : f32
    %239 = vector.broadcast %cst_84 : f32 to vector<8x32xf32>
    %240 = arith.subf %239, %233 : vector<8x32xf32>
    %241 = arith.mulf %240, %238 : vector<8x32xf32>
    %242 = arith.mulf %233, %195 : vector<8x32xf32>
    %243 = arith.addf %241, %242 : vector<8x32xf32>
    %c24_85 = arith.constant 24 : index
    %c0_86 = arith.constant 0 : index
    %244 = vector.load %arg17[%c24_85, %c0_86] : memref<64x96xf32, #tpu.memory_space<vmem>>, vector<8x96xf32>
    %cst_87 = arith.constant dense<0.000000e+00> : vector<8x96xf32>
    %245 = tpu.matmul %218, %21, %cst_87 {dimension_numbers = #tpu.dot_dimension_numbers<[1], [0], [0], [1], [0, 0, 1, 1], [], []>} : vector<8x32xf32>, vector<32x96xf32>, vector<8x96xf32> -> vector<8x96xf32>
    %246 = arith.addf %245, %27 : vector<8x96xf32>
    %247 = vector.extract_strided_slice %244 {offsets = [0, 0], sizes = [8, 64], strides = [1, 1]} : vector<8x96xf32> to vector<8x64xf32>
    %248 = vector.extract_strided_slice %246 {offsets = [0, 0], sizes = [8, 64], strides = [1, 1]} : vector<8x96xf32> to vector<8x64xf32>
    %249 = arith.addf %247, %248 : vector<8x64xf32>
    %250 = arith.negf %249 : vector<8x64xf32>
    %251 = math.exp %250 : vector<8x64xf32>
    %cst_88 = arith.constant 1.000000e+00 : f32
    %252 = vector.broadcast %cst_88 : f32 to vector<8x64xf32>
    %253 = arith.addf %252, %251 : vector<8x64xf32>
    %254 = arith.divf %252, %253 : vector<8x64xf32>
    %255 = vector.extract_strided_slice %254 {offsets = [0, 0], sizes = [8, 32], strides = [1, 1]} : vector<8x64xf32> to vector<8x32xf32>
    %256 = vector.extract_strided_slice %254 {offsets = [0, 32], sizes = [8, 32], strides = [1, 1]} : vector<8x64xf32> to vector<8x32xf32>
    %257 = vector.extract_strided_slice %244 {offsets = [0, 64], sizes = [8, 32], strides = [1, 1]} : vector<8x96xf32> to vector<8x32xf32>
    %258 = vector.extract_strided_slice %246 {offsets = [0, 64], sizes = [8, 32], strides = [1, 1]} : vector<8x96xf32> to vector<8x32xf32>
    %259 = arith.mulf %255, %258 : vector<8x32xf32>
    %260 = arith.addf %257, %259 : vector<8x32xf32>
    %261 = math.tanh %260 : vector<8x32xf32>
    %cst_89 = arith.constant 1.000000e+00 : f32
    %262 = vector.broadcast %cst_89 : f32 to vector<8x32xf32>
    %263 = arith.subf %262, %256 : vector<8x32xf32>
    %264 = arith.mulf %263, %261 : vector<8x32xf32>
    %265 = arith.mulf %256, %218 : vector<8x32xf32>
    %266 = arith.addf %264, %265 : vector<8x32xf32>
    %c32_90 = arith.constant 32 : index
    %c0_91 = arith.constant 0 : index
    %267 = vector.load %arg18[%c32_90, %c0_91] : memref<64x32xf32, #tpu.memory_space<vmem>>, vector<8x32xf32>
    tpu.vector_store %arg18[%c32_90, %c0_91], %243 {strides = array<i32>} : memref<64x32xf32, #tpu.memory_space<vmem>>, vector<8x32xf32>,
    %c24_92 = arith.constant 24 : index
    %c0_93 = arith.constant 0 : index
    %268 = vector.load %arg19[%c24_92, %c0_93] : memref<64x32xf32, #tpu.memory_space<vmem>>, vector<8x32xf32>
    tpu.vector_store %arg19[%c24_92, %c0_93], %266 {strides = array<i32>} : memref<64x32xf32, #tpu.memory_space<vmem>>, vector<8x32xf32>,
    %c40_94 = arith.constant 40 : index
    %c0_95 = arith.constant 0 : index
    %269 = vector.load %arg16[%c40_94, %c0_95] : memref<64x96xf32, #tpu.memory_space<vmem>>, vector<8x96xf32>
    %cst_96 = arith.constant dense<0.000000e+00> : vector<8x96xf32>
    %270 = tpu.matmul %243, %20, %cst_96 {dimension_numbers = #tpu.dot_dimension_numbers<[1], [0], [0], [1], [0, 0, 1, 1], [], []>} : vector<8x32xf32>, vector<32x96xf32>, vector<8x96xf32> -> vector<8x96xf32>
    %271 = arith.addf %270, %24 : vector<8x96xf32>
    %272 = vector.extract_strided_slice %269 {offsets = [0, 0], sizes = [8, 64], strides = [1, 1]} : vector<8x96xf32> to vector<8x64xf32>
    %273 = vector.extract_strided_slice %271 {offsets = [0, 0], sizes = [8, 64], strides = [1, 1]} : vector<8x96xf32> to vector<8x64xf32>
    %274 = arith.addf %272, %273 : vector<8x64xf32>
    %275 = arith.negf %274 : vector<8x64xf32>
    %276 = math.exp %275 : vector<8x64xf32>
    %cst_97 = arith.constant 1.000000e+00 : f32
    %277 = vector.broadcast %cst_97 : f32 to vector<8x64xf32>
    %278 = arith.addf %277, %276 : vector<8x64xf32>
    %279 = arith.divf %277, %278 : vector<8x64xf32>
    %280 = vector.extract_strided_slice %279 {offsets = [0, 0], sizes = [8, 32], strides = [1, 1]} : vector<8x64xf32> to vector<8x32xf32>
    %281 = vector.extract_strided_slice %279 {offsets = [0, 32], sizes = [8, 32], strides = [1, 1]} : vector<8x64xf32> to vector<8x32xf32>
    %282 = vector.extract_strided_slice %269 {offsets = [0, 64], sizes = [8, 32], strides = [1, 1]} : vector<8x96xf32> to vector<8x32xf32>
    %283 = vector.extract_strided_slice %271 {offsets = [0, 64], sizes = [8, 32], strides = [1, 1]} : vector<8x96xf32> to vector<8x32xf32>
    %284 = arith.mulf %280, %283 : vector<8x32xf32>
    %285 = arith.addf %282, %284 : vector<8x32xf32>
    %286 = math.tanh %285 : vector<8x32xf32>
    %cst_98 = arith.constant 1.000000e+00 : f32
    %287 = vector.broadcast %cst_98 : f32 to vector<8x32xf32>
    %288 = arith.subf %287, %281 : vector<8x32xf32>
    %289 = arith.mulf %288, %286 : vector<8x32xf32>
    %290 = arith.mulf %281, %243 : vector<8x32xf32>
    %291 = arith.addf %289, %290 : vector<8x32xf32>
    %c16_99 = arith.constant 16 : index
    %c0_100 = arith.constant 0 : index
    %292 = vector.load %arg17[%c16_99, %c0_100] : memref<64x96xf32, #tpu.memory_space<vmem>>, vector<8x96xf32>
    %cst_101 = arith.constant dense<0.000000e+00> : vector<8x96xf32>
    %293 = tpu.matmul %266, %21, %cst_101 {dimension_numbers = #tpu.dot_dimension_numbers<[1], [0], [0], [1], [0, 0, 1, 1], [], []>} : vector<8x32xf32>, vector<32x96xf32>, vector<8x96xf32> -> vector<8x96xf32>
    %294 = arith.addf %293, %27 : vector<8x96xf32>
    %295 = vector.extract_strided_slice %292 {offsets = [0, 0], sizes = [8, 64], strides = [1, 1]} : vector<8x96xf32> to vector<8x64xf32>
    %296 = vector.extract_strided_slice %294 {offsets = [0, 0], sizes = [8, 64], strides = [1, 1]} : vector<8x96xf32> to vector<8x64xf32>
    %297 = arith.addf %295, %296 : vector<8x64xf32>
    %298 = arith.negf %297 : vector<8x64xf32>
    %299 = math.exp %298 : vector<8x64xf32>
    %cst_102 = arith.constant 1.000000e+00 : f32
    %300 = vector.broadcast %cst_102 : f32 to vector<8x64xf32>
    %301 = arith.addf %300, %299 : vector<8x64xf32>
    %302 = arith.divf %300, %301 : vector<8x64xf32>
    %303 = vector.extract_strided_slice %302 {offsets = [0, 0], sizes = [8, 32], strides = [1, 1]} : vector<8x64xf32> to vector<8x32xf32>
    %304 = vector.extract_strided_slice %302 {offsets = [0, 32], sizes = [8, 32], strides = [1, 1]} : vector<8x64xf32> to vector<8x32xf32>
    %305 = vector.extract_strided_slice %292 {offsets = [0, 64], sizes = [8, 32], strides = [1, 1]} : vector<8x96xf32> to vector<8x32xf32>
    %306 = vector.extract_strided_slice %294 {offsets = [0, 64], sizes = [8, 32], strides = [1, 1]} : vector<8x96xf32> to vector<8x32xf32>
    %307 = arith.mulf %303, %306 : vector<8x32xf32>
    %308 = arith.addf %305, %307 : vector<8x32xf32>
    %309 = math.tanh %308 : vector<8x32xf32>
    %cst_103 = arith.constant 1.000000e+00 : f32
    %310 = vector.broadcast %cst_103 : f32 to vector<8x32xf32>
    %311 = arith.subf %310, %304 : vector<8x32xf32>
    %312 = arith.mulf %311, %309 : vector<8x32xf32>
    %313 = arith.mulf %304, %266 : vector<8x32xf32>
    %314 = arith.addf %312, %313 : vector<8x32xf32>
    %c40_104 = arith.constant 40 : index
    %c0_105 = arith.constant 0 : index
    %315 = vector.load %arg18[%c40_104, %c0_105] : memref<64x32xf32, #tpu.memory_space<vmem>>, vector<8x32xf32>
    tpu.vector_store %arg18[%c40_104, %c0_105], %291 {strides = array<i32>} : memref<64x32xf32, #tpu.memory_space<vmem>>, vector<8x32xf32>,
    %c16_106 = arith.constant 16 : index
    %c0_107 = arith.constant 0 : index
    %316 = vector.load %arg19[%c16_106, %c0_107] : memref<64x32xf32, #tpu.memory_space<vmem>>, vector<8x32xf32>
    tpu.vector_store %arg19[%c16_106, %c0_107], %314 {strides = array<i32>} : memref<64x32xf32, #tpu.memory_space<vmem>>, vector<8x32xf32>,
    %c48_108 = arith.constant 48 : index
    %c0_109 = arith.constant 0 : index
    %317 = vector.load %arg16[%c48_108, %c0_109] : memref<64x96xf32, #tpu.memory_space<vmem>>, vector<8x96xf32>
    %cst_110 = arith.constant dense<0.000000e+00> : vector<8x96xf32>
    %318 = tpu.matmul %291, %20, %cst_110 {dimension_numbers = #tpu.dot_dimension_numbers<[1], [0], [0], [1], [0, 0, 1, 1], [], []>} : vector<8x32xf32>, vector<32x96xf32>, vector<8x96xf32> -> vector<8x96xf32>
    %319 = arith.addf %318, %24 : vector<8x96xf32>
    %320 = vector.extract_strided_slice %317 {offsets = [0, 0], sizes = [8, 64], strides = [1, 1]} : vector<8x96xf32> to vector<8x64xf32>
    %321 = vector.extract_strided_slice %319 {offsets = [0, 0], sizes = [8, 64], strides = [1, 1]} : vector<8x96xf32> to vector<8x64xf32>
    %322 = arith.addf %320, %321 : vector<8x64xf32>
    %323 = arith.negf %322 : vector<8x64xf32>
    %324 = math.exp %323 : vector<8x64xf32>
    %cst_111 = arith.constant 1.000000e+00 : f32
    %325 = vector.broadcast %cst_111 : f32 to vector<8x64xf32>
    %326 = arith.addf %325, %324 : vector<8x64xf32>
    %327 = arith.divf %325, %326 : vector<8x64xf32>
    %328 = vector.extract_strided_slice %327 {offsets = [0, 0], sizes = [8, 32], strides = [1, 1]} : vector<8x64xf32> to vector<8x32xf32>
    %329 = vector.extract_strided_slice %327 {offsets = [0, 32], sizes = [8, 32], strides = [1, 1]} : vector<8x64xf32> to vector<8x32xf32>
    %330 = vector.extract_strided_slice %317 {offsets = [0, 64], sizes = [8, 32], strides = [1, 1]} : vector<8x96xf32> to vector<8x32xf32>
    %331 = vector.extract_strided_slice %319 {offsets = [0, 64], sizes = [8, 32], strides = [1, 1]} : vector<8x96xf32> to vector<8x32xf32>
    %332 = arith.mulf %328, %331 : vector<8x32xf32>
    %333 = arith.addf %330, %332 : vector<8x32xf32>
    %334 = math.tanh %333 : vector<8x32xf32>
    %cst_112 = arith.constant 1.000000e+00 : f32
    %335 = vector.broadcast %cst_112 : f32 to vector<8x32xf32>
    %336 = arith.subf %335, %329 : vector<8x32xf32>
    %337 = arith.mulf %336, %334 : vector<8x32xf32>
    %338 = arith.mulf %329, %291 : vector<8x32xf32>
    %339 = arith.addf %337, %338 : vector<8x32xf32>
    %c8_113 = arith.constant 8 : index
    %c0_114 = arith.constant 0 : index
    %340 = vector.load %arg17[%c8_113, %c0_114] : memref<64x96xf32, #tpu.memory_space<vmem>>, vector<8x96xf32>
    %cst_115 = arith.constant dense<0.000000e+00> : vector<8x96xf32>
    %341 = tpu.matmul %314, %21, %cst_115 {dimension_numbers = #tpu.dot_dimension_numbers<[1], [0], [0], [1], [0, 0, 1, 1], [], []>} : vector<8x32xf32>, vector<32x96xf32>, vector<8x96xf32> -> vector<8x96xf32>
    %342 = arith.addf %341, %27 : vector<8x96xf32>
    %343 = vector.extract_strided_slice %340 {offsets = [0, 0], sizes = [8, 64], strides = [1, 1]} : vector<8x96xf32> to vector<8x64xf32>
    %344 = vector.extract_strided_slice %342 {offsets = [0, 0], sizes = [8, 64], strides = [1, 1]} : vector<8x96xf32> to vector<8x64xf32>
    %345 = arith.addf %343, %344 : vector<8x64xf32>
    %346 = arith.negf %345 : vector<8x64xf32>
    %347 = math.exp %346 : vector<8x64xf32>
    %cst_116 = arith.constant 1.000000e+00 : f32
    %348 = vector.broadcast %cst_116 : f32 to vector<8x64xf32>
    %349 = arith.addf %348, %347 : vector<8x64xf32>
    %350 = arith.divf %348, %349 : vector<8x64xf32>
    %351 = vector.extract_strided_slice %350 {offsets = [0, 0], sizes = [8, 32], strides = [1, 1]} : vector<8x64xf32> to vector<8x32xf32>
    %352 = vector.extract_strided_slice %350 {offsets = [0, 32], sizes = [8, 32], strides = [1, 1]} : vector<8x64xf32> to vector<8x32xf32>
    %353 = vector.extract_strided_slice %340 {offsets = [0, 64], sizes = [8, 32], strides = [1, 1]} : vector<8x96xf32> to vector<8x32xf32>
    %354 = vector.extract_strided_slice %342 {offsets = [0, 64], sizes = [8, 32], strides = [1, 1]} : vector<8x96xf32> to vector<8x32xf32>
    %355 = arith.mulf %351, %354 : vector<8x32xf32>
    %356 = arith.addf %353, %355 : vector<8x32xf32>
    %357 = math.tanh %356 : vector<8x32xf32>
    %cst_117 = arith.constant 1.000000e+00 : f32
    %358 = vector.broadcast %cst_117 : f32 to vector<8x32xf32>
    %359 = arith.subf %358, %352 : vector<8x32xf32>
    %360 = arith.mulf %359, %357 : vector<8x32xf32>
    %361 = arith.mulf %352, %314 : vector<8x32xf32>
    %362 = arith.addf %360, %361 : vector<8x32xf32>
    %c48_118 = arith.constant 48 : index
    %c0_119 = arith.constant 0 : index
    %363 = vector.load %arg18[%c48_118, %c0_119] : memref<64x32xf32, #tpu.memory_space<vmem>>, vector<8x32xf32>
    tpu.vector_store %arg18[%c48_118, %c0_119], %339 {strides = array<i32>} : memref<64x32xf32, #tpu.memory_space<vmem>>, vector<8x32xf32>,
    %c8_120 = arith.constant 8 : index
    %c0_121 = arith.constant 0 : index
    %364 = vector.load %arg19[%c8_120, %c0_121] : memref<64x32xf32, #tpu.memory_space<vmem>>, vector<8x32xf32>
    tpu.vector_store %arg19[%c8_120, %c0_121], %362 {strides = array<i32>} : memref<64x32xf32, #tpu.memory_space<vmem>>, vector<8x32xf32>,
    %c56_122 = arith.constant 56 : index
    %c0_123 = arith.constant 0 : index
    %365 = vector.load %arg16[%c56_122, %c0_123] : memref<64x96xf32, #tpu.memory_space<vmem>>, vector<8x96xf32>
    %cst_124 = arith.constant dense<0.000000e+00> : vector<8x96xf32>
    %366 = tpu.matmul %339, %20, %cst_124 {dimension_numbers = #tpu.dot_dimension_numbers<[1], [0], [0], [1], [0, 0, 1, 1], [], []>} : vector<8x32xf32>, vector<32x96xf32>, vector<8x96xf32> -> vector<8x96xf32>
    %367 = arith.addf %366, %24 : vector<8x96xf32>
    %368 = vector.extract_strided_slice %365 {offsets = [0, 0], sizes = [8, 64], strides = [1, 1]} : vector<8x96xf32> to vector<8x64xf32>
    %369 = vector.extract_strided_slice %367 {offsets = [0, 0], sizes = [8, 64], strides = [1, 1]} : vector<8x96xf32> to vector<8x64xf32>
    %370 = arith.addf %368, %369 : vector<8x64xf32>
    %371 = arith.negf %370 : vector<8x64xf32>
    %372 = math.exp %371 : vector<8x64xf32>
    %cst_125 = arith.constant 1.000000e+00 : f32
    %373 = vector.broadcast %cst_125 : f32 to vector<8x64xf32>
    %374 = arith.addf %373, %372 : vector<8x64xf32>
    %375 = arith.divf %373, %374 : vector<8x64xf32>
    %376 = vector.extract_strided_slice %375 {offsets = [0, 0], sizes = [8, 32], strides = [1, 1]} : vector<8x64xf32> to vector<8x32xf32>
    %377 = vector.extract_strided_slice %375 {offsets = [0, 32], sizes = [8, 32], strides = [1, 1]} : vector<8x64xf32> to vector<8x32xf32>
    %378 = vector.extract_strided_slice %365 {offsets = [0, 64], sizes = [8, 32], strides = [1, 1]} : vector<8x96xf32> to vector<8x32xf32>
    %379 = vector.extract_strided_slice %367 {offsets = [0, 64], sizes = [8, 32], strides = [1, 1]} : vector<8x96xf32> to vector<8x32xf32>
    %380 = arith.mulf %376, %379 : vector<8x32xf32>
    %381 = arith.addf %378, %380 : vector<8x32xf32>
    %382 = math.tanh %381 : vector<8x32xf32>
    %cst_126 = arith.constant 1.000000e+00 : f32
    %383 = vector.broadcast %cst_126 : f32 to vector<8x32xf32>
    %384 = arith.subf %383, %377 : vector<8x32xf32>
    %385 = arith.mulf %384, %382 : vector<8x32xf32>
    %386 = arith.mulf %377, %339 : vector<8x32xf32>
    %387 = arith.addf %385, %386 : vector<8x32xf32>
    %c0_127 = arith.constant 0 : index
    %c0_128 = arith.constant 0 : index
    %388 = vector.load %arg17[%c0_127, %c0_128] : memref<64x96xf32, #tpu.memory_space<vmem>>, vector<8x96xf32>
    %cst_129 = arith.constant dense<0.000000e+00> : vector<8x96xf32>
    %389 = tpu.matmul %362, %21, %cst_129 {dimension_numbers = #tpu.dot_dimension_numbers<[1], [0], [0], [1], [0, 0, 1, 1], [], []>} : vector<8x32xf32>, vector<32x96xf32>, vector<8x96xf32> -> vector<8x96xf32>
    %390 = arith.addf %389, %27 : vector<8x96xf32>
    %391 = vector.extract_strided_slice %388 {offsets = [0, 0], sizes = [8, 64], strides = [1, 1]} : vector<8x96xf32> to vector<8x64xf32>
    %392 = vector.extract_strided_slice %390 {offsets = [0, 0], sizes = [8, 64], strides = [1, 1]} : vector<8x96xf32> to vector<8x64xf32>
    %393 = arith.addf %391, %392 : vector<8x64xf32>
    %394 = arith.negf %393 : vector<8x64xf32>
    %395 = math.exp %394 : vector<8x64xf32>
    %cst_130 = arith.constant 1.000000e+00 : f32
    %396 = vector.broadcast %cst_130 : f32 to vector<8x64xf32>
    %397 = arith.addf %396, %395 : vector<8x64xf32>
    %398 = arith.divf %396, %397 : vector<8x64xf32>
    %399 = vector.extract_strided_slice %398 {offsets = [0, 0], sizes = [8, 32], strides = [1, 1]} : vector<8x64xf32> to vector<8x32xf32>
    %400 = vector.extract_strided_slice %398 {offsets = [0, 32], sizes = [8, 32], strides = [1, 1]} : vector<8x64xf32> to vector<8x32xf32>
    %401 = vector.extract_strided_slice %388 {offsets = [0, 64], sizes = [8, 32], strides = [1, 1]} : vector<8x96xf32> to vector<8x32xf32>
    %402 = vector.extract_strided_slice %390 {offsets = [0, 64], sizes = [8, 32], strides = [1, 1]} : vector<8x96xf32> to vector<8x32xf32>
    %403 = arith.mulf %399, %402 : vector<8x32xf32>
    %404 = arith.addf %401, %403 : vector<8x32xf32>
    %405 = math.tanh %404 : vector<8x32xf32>
    %cst_131 = arith.constant 1.000000e+00 : f32
    %406 = vector.broadcast %cst_131 : f32 to vector<8x32xf32>
    %407 = arith.subf %406, %400 : vector<8x32xf32>
    %408 = arith.mulf %407, %405 : vector<8x32xf32>
    %409 = arith.mulf %400, %362 : vector<8x32xf32>
    %410 = arith.addf %408, %409 : vector<8x32xf32>
    %c56_132 = arith.constant 56 : index
    %c0_133 = arith.constant 0 : index
    %411 = vector.load %arg18[%c56_132, %c0_133] : memref<64x32xf32, #tpu.memory_space<vmem>>, vector<8x32xf32>
    tpu.vector_store %arg18[%c56_132, %c0_133], %387 {strides = array<i32>} : memref<64x32xf32, #tpu.memory_space<vmem>>, vector<8x32xf32>,
    %c0_134 = arith.constant 0 : index
    %c0_135 = arith.constant 0 : index
    %412 = vector.load %arg19[%c0_134, %c0_135] : memref<64x32xf32, #tpu.memory_space<vmem>>, vector<8x32xf32>
    tpu.vector_store %arg19[%c0_134, %c0_135], %410 {strides = array<i32>} : memref<64x32xf32, #tpu.memory_space<vmem>>, vector<8x32xf32>,
    %c0_136 = arith.constant 0 : index
    %c0_137 = arith.constant 0 : index
    %413 = vector.load %arg18[%c0_136, %c0_137] : memref<64x32xf32, #tpu.memory_space<vmem>>, vector<64x32xf32>
    %c0_138 = arith.constant 0 : index
    %c0_139 = arith.constant 0 : index
    %414 = vector.load %arg12[%c0_138, %c0_139] : memref<32x128xf32, #tpu.memory_space<vmem>>, vector<32x128xf32>
    %cst_140 = arith.constant dense<0.000000e+00> : vector<64x128xf32>
    %415 = tpu.matmul %413, %414, %cst_140 {dimension_numbers = #tpu.dot_dimension_numbers<[1], [0], [0], [1], [0, 0, 1, 1], [], []>} : vector<64x32xf32>, vector<32x128xf32>, vector<64x128xf32> -> vector<64x128xf32>
    %c0_141 = arith.constant 0 : index
    %c0_142 = arith.constant 0 : index
    %416 = vector.load %arg19[%c0_141, %c0_142] : memref<64x32xf32, #tpu.memory_space<vmem>>, vector<64x32xf32>
    %c0_143 = arith.constant 0 : index
    %c0_144 = arith.constant 0 : index
    %417 = vector.load %arg13[%c0_143, %c0_144] : memref<32x128xf32, #tpu.memory_space<vmem>>, vector<32x128xf32>
    %cst_145 = arith.constant dense<0.000000e+00> : vector<64x128xf32>
    %418 = tpu.matmul %416, %417, %cst_145 {dimension_numbers = #tpu.dot_dimension_numbers<[1], [0], [0], [1], [0, 0, 1, 1], [], []>} : vector<64x32xf32>, vector<32x128xf32>, vector<64x128xf32> -> vector<64x128xf32>
    %419 = arith.addf %415, %418 : vector<64x128xf32>
    %c0_146 = arith.constant 0 : index
    %c0_147 = arith.constant 0 : index
    %420 = vector.load %arg14[%c0_146, %c0_147] : memref<1x128xf32, #tpu.memory_space<vmem>>, vector<1x128xf32>
    %421 = vector.broadcast %420 : vector<1x128xf32> to vector<64x128xf32>
    %422 = arith.addf %419, %421 : vector<64x128xf32>
    %c0_148 = arith.constant 0 : index
    %c0_149 = arith.constant 0 : index
    %423 = vector.load %arg15[%c0_148, %c0_149] : memref<64x128xf32, #tpu.memory_space<vmem>>, vector<64x128xf32>
    tpu.vector_store %arg15[%c0_148, %c0_149], %422 {strides = array<i32>} : memref<64x128xf32, #tpu.memory_space<vmem>>, vector<64x128xf32>,
    return
  }
}

</mosaic_0001>

<bundles_post_ra>
// kernel: tpu_custom_call.1
= control target key start
LH: loop header
LB: loop body
LE: loop exit
PB: predicated region body
PF: predicated region fallthrough
CT: control target
= control target key end

     0   :  { %vm94_vm0 = vcmask 1043456   ;;  %vm69_vm1 = vcmask 31744   ;;  %v3370_v16 = vmov 0.0|0.0   ;;  %s3957_s0 = inlined_call_operand.vmem [shape: f32[64,4], index: 0, kind: input, shape index: {}]   ;;  %s3958_s1 = inlined_call_operand.vmem [shape: f32[64,4], index: 1, kind: input, shape index: {}]   ;;  %s3959_s2 = inlined_call_operand.vmem [shape: f32[4,96], index: 2, kind: input, shape index: {}]   ;;  %s3960_s3 = inlined_call_operand.vmem [shape: f32[4,96], index: 3, kind: input, shape index: {}]   ;;  %s3961_s4 = inlined_call_operand.vmem [shape: f32[1,96], index: 4, kind: input, shape index: {}]   ;;  %s3962_s5 = inlined_call_operand.vmem [shape: f32[1,96], index: 5, kind: input, shape index: {}]   ;;  %s3963_s6 = inlined_call_operand.vmem [shape: f32[32,96], index: 6, kind: input, shape index: {}]   ;;  %s3964_s7 = inlined_call_operand.vmem [shape: f32[4,96], index: 7, kind: input, shape index: {}]   ;;  %s3965_s8 = inlined_call_operand.vmem [shape: f32[4,96], index: 8, kind: input, shape index: {}]   ;;  %s3966_s9 = inlined_call_operand.vmem [shape: f32[1,96], index: 9, kind: input, shape index: {}]   ;;  %s3967_s10 = inlined_call_operand.vmem [shape: f32[1,96], index: 10, kind: input, shape index: {}]   ;;  %s3968_s11 = inlined_call_operand.vmem [shape: f32[32,96], index: 11, kind: input, shape index: {}]   ;;  %s3969_s12 = inlined_call_operand.vmem [shape: f32[32,128], index: 12, kind: input, shape index: {}]   ;;  %s3970_s13 = inlined_call_operand.vmem [shape: f32[32,128], index: 13, kind: input, shape index: {}]   ;;  %s3971_s14 = inlined_call_operand.vmem [shape: f32[1,128], index: 14, kind: input, shape index: {}]   ;;  %s3972_s15 = inlined_call_operand.hbm [shape: f32[64,128], index: 15, kind: output, shape index: {}]  }
   0x1   :  { %v68_v0 = vld [vmem:[%s3960_s3] sm:$0xf]  ;;  %v60_v4 = vld [vmem:[%s3958_s1 + $0x8] sm:$0xff]  ;;  %v61_v7 = vld [vmem:[%s3958_s1 + $0x10] sm:$0xff] }
   0x2   :  { %v67_v1 = vld [vmem:[%s3959_s2] sm:$0xf]  ;;  %2834 = vmatprep.subr.msk.mxu1 %vm94_vm0, %v68_v0  ;;  %v3480_v5 = vld [vmem:[%s3957_s0 + $0x8] sm:$0xff]  ;;  %v3496_v8 = vld [vmem:[%s3957_s0 + $0x10] sm:$0xff] }
   0x3   :  { %v59_v2 = vld [vmem:[%s3958_s1] sm:$0xff]  ;;  %2848 = vmatprep.subr.msk.mxu0 %vm94_vm0, %v67_v1  ;;  %2835 = vmatpush3.msk.msra.mxu1 %vm94_vm0, %v68_v0  ;;  %v62_v9 = vld [vmem:[%s3958_s1 + $0x18] sm:$0xff]  ;;  %v601_v12 = vld [vmem:[%s3963_s6 + $0x8] sm:$0xff] }
   0x4   :  { %v3472_v3 = vld [vmem:[%s3957_s0] sm:$0xff]  ;;  %2836 = vmatprep.mubr.msk.f32.mxu1 %vm69_vm1, %v59_v2  ;;  %2849 = vmatpush3.msk.msra.mxu0 %vm94_vm0, %v67_v1  ;;  %v3509_v10 = vld [vmem:[%s3957_s0 + $0x18] sm:$0xff]  ;;  %v602_v17 = vld [vmem:[%s3963_s6 + $0x10] sm:$0xff] }
   0x5   :  { %v360_v6 = vld [vmem:[%s3965_s8] sm:$0xf]  ;;  %2850 = vmatprep.mubr.msk.f32.mxu0 %vm69_vm1, %v3472_v3  ;;  %2837 = vmatmul.mubr.msk.f32.vlgmr.msra.gmra.mrb[0].mxu1 %vm69_vm1, %v60_v4  ;;  %v603_v18 = vld [vmem:[%s3963_s6 + $0x18] sm:$0xff]  ;;  %v64_v20 = vld [vmem:[%s3958_s1 + $0x28] sm:$0xff] }
   0x6   :  { %2851 = vmatmul.mubr.msk.f32.vlgmr.msra.gmra.mrb[0].mxu0 %vm69_vm1, %v3480_v5  ;;  %2862 = vmatprep.subr.msk.mxu1 %vm94_vm0, %v360_v6  ;;  %v600_v11 = vld [vmem:[%s3963_s6] sm:$0xff]  ;;  %v56_v21 = vld [vmem:[%s3957_s0 + $0x28] sm:$0xff] }
   0x7   :  { %2839 = vmatprep.mubr.msk.f32.mxu1 %vm69_vm1, %v61_v7  ;;  %2863 = vmatpush3.msk.msra.mxu1 %vm94_vm0, %v360_v6  ;;  %v63_v13 = vld [vmem:[%s3958_s1 + $0x20] sm:$0xff]  ;;  %v3526_v15 = vpack.c.bf16 %v601_v12, %v600_v11 }
   0x8   :  { %2853 = vmatprep.mubr.msk.f32.mxu0 %vm69_vm1, %v3496_v8  ;;  %v55_v14 = vld [vmem:[%s3957_s0 + $0x20] sm:$0xff]  ;;  %3106 = vmatprep.subr.bf16.mxu0 %v3370_v16 }
   0x9   :  { %v359_v19 = vld [vmem:[%s3964_s7] sm:$0xf]  ;;  %2840 = vmatmul.mubr.msk.f32.gmra.mrb[2].mxu1 %vm69_vm1, %v62_v9 }
   0xa   :  { %2854 = vmatmul.mubr.msk.f32.gmra.mrb[2].mxu0 %vm69_vm1, %v3509_v10  ;;  %2842 = vmatprep.mubr.msk.f32.mxu1 %vm69_vm1, %v63_v13 }
   0xb   :  { %2856 = vmatprep.mubr.msk.f32.mxu0 %vm69_vm1, %v55_v14 }
   0xc   :  { %20 = vsyncpa [#allocation7], 0  ;;  %3108 = vmatpush3.bf16.msra.mxu0 %v3526_v15  ;;  %v65_v22 = vld [vmem:[%s3958_s1 + $0x30] sm:$0xff]  ;;  %v3556_v24 = vpack.c.bf16 %v603_v18, %v602_v17  ;;  %2876 = vmatprep.subr.msk.mxu1 %vm94_vm0, %v359_v19  ;;  %v66_v25 = vld [vmem:[%s3958_s1 + $0x38] sm:$0xff]  ;;  %vm3371_vm2 = vmmov 0   ;;  %v3372_v27 = vmov 0.0  }
   0xd   :  { %v57_v23 = vld [vmem:[%s3957_s0 + $0x30] sm:$0xff]  ;;  %3109 = vmatprep.subr.bf16.mxu0 %v3370_v16  ;;  %2843 = vmatmul.mubr.msk.f32.gmra.mrb[4].mxu1 %vm69_vm1, %v64_v20  ;;  %v58_v26 = vld [vmem:[%s3957_s0 + $0x38] sm:$0xff]  ;;  %v604_v28 = vld [vmem:[%s3968_s11] sm:$0xff]  ;;  %vm350_vm3 = vcmask 785408   ;;  %s3373_s21 = smov 64   ;;  %vm623_vm4 = vcmask 261120  }
   0xe   :  { %2857 = vmatmul.mubr.msk.f32.gmra.mrb[4].mxu0 %vm69_vm1, %v56_v21  ;;  %2845 = vmatprep.mubr.msk.f32.mxu1 %vm69_vm1, %v65_v22  ;;  %v605_v29 = vld [vmem:[%s3968_s11 + $0x8] sm:$0xff]  ;;  %v606_v31 = vld [vmem:[%s3968_s11 + $0x10] sm:$0xff]  ;;  %v607_v32 = vld [vmem:[%s3968_s11 + $0x18] sm:$0xff]  ;;  %s3375_s16 = smov [#allocation6]  }
   0xf   :  { %2859 = vmatprep.mubr.msk.f32.mxu0 %vm69_vm1, %v57_v23  ;;  %v3601_v30 = vpack.c.bf16 %v605_v29, %v604_v28  ;;  %v3614_v33 = vpack.c.bf16 %v607_v32, %v606_v31  ;;  %v2625_v36 = vld [vmem:[%s3961_s4] ss:$0 sm:$0xff]  ;;  %s2596_s11 = sshll.u32 %s3375_s16, 4  ;;  %s2597_s11 = int_to_ptr.vmem [resolvable:$true] %s2596_s11 }
  0x10   :  { %3111 = vmatpush3.bf16.msra.mxu0 %v3556_v24  ;;  %v3665_v31 = vld [vmem:[%s3962_s5] ss:$0 sm:$0xff]  ;;  %s3374_s5 = smov 96   ;;  %p3351_p1 = scmp.lt.s32.totalorder %s2597_s11, %s2597_s11 }
  0x11   :  { %3118 = vmatprep.subr.bf16.mxu0 %v3370_v16  ;;  %2846 = vmatmul.mubr.msk.f32.gmra.mrb[6].mxu1 %vm69_vm1, %v66_v25 }
  0x12   :  { %2860 = vmatmul.mubr.msk.f32.gmra.mrb[6].mxu0 %vm69_vm1, %v58_v26  ;;  %2864 = vmatprep.mubr.msk.f32.mxu1 %vm69_vm1, %v59_v2 }
  0x13   :  { %2898 = vmatprep.mubr.msk.f32.mxu0 %vm3371_vm2, %v3372_v27 }
  0x15   :  { %2865 = vmatmul.mubr.msk.f32.vlgmr.msra.gmra.mrb[8].mxu1 %vm69_vm1, %v60_v4 }
  0x16   :  { %2899 = vmatmul.mubr.f32.vlgmr.msra.gmra.mrb[8].mxu0 %v3372_v27  ;;  %2877 = vmatpush3.msk.msra.mxu1 %vm94_vm0, %v359_v19 }
  0x17   :  { %2867 = vmatprep.mubr.msk.f32.mxu1 %vm69_vm1, %v61_v7  ;;  %3112 = vmatprep.subr.bf16.mxu1 %v3370_v16 }
  0x18   :  { %3120 = vmatpush3.bf16.msra.mxu0 %v3526_v15  ;;  %2920 = vmatprep.mubr.msk.f32.mxu0 %vm3371_vm2, %v3372_v27 }
  0x19   :  { %3121 = vmatprep.subr.bf16.mxu0 %v3370_v16  ;;  %2868 = vmatmul.mubr.msk.f32.gmra.mrb[10].mxu1 %vm69_vm1, %v62_v9 }
  0x1a   :  { %2870 = vmatprep.mubr.msk.f32.mxu1 %vm69_vm1, %v63_v13 }
  0x1c   :  { %3123 = vmatpush3.bf16.msra.mxu0 %v3556_v24 }
  0x1d   :  { %3130 = vmatprep.subr.bf16.mxu0 %v3370_v16  ;;  %2871 = vmatmul.mubr.msk.f32.gmra.mrb[12].mxu1 %vm69_vm1, %v64_v20 }
  0x1e   :  { %2873 = vmatprep.mubr.msk.f32.mxu1 %vm69_vm1, %v65_v22 }
  0x21   :  { %2874 = vmatmul.mubr.msk.f32.gmra.mrb[14].mxu1 %vm69_vm1, %v66_v25  ;;  %v3657_v25 = vld [vmem:[%s3967_s10] ss:$0 sm:$0xff] }
  0x22   :  { %2878 = vmatprep.mubr.msk.f32.mxu1 %vm69_vm1, %v3472_v3 }
  0x25   :  { %2879 = vmatmul.mubr.msk.f32.vlgmr.msra.gmra.mrb[8].mxu1 %vm69_vm1, %v3480_v5  ;;  %v2644_v5 = vld [vmem:[%s3966_s9] ss:$0 sm:$0xff] }
  0x26   :  { %3114 = vmatpush3.bf16.msra.mxu1 %v3601_v30  ;;  %2881 = vmatprep.mubr.msk.f32.mxu1 %vm69_vm1, %v3496_v8 }
  0x27   :  { %3115 = vmatprep.subr.bf16.mxu1 %v3370_v16 }
  0x29   :  { %2882 = vmatmul.mubr.msk.f32.gmra.mrb[10].mxu1 %vm69_vm1, %v3509_v10 }
  0x2a   :  { %2884 = vmatprep.mubr.msk.f32.mxu1 %vm69_vm1, %v55_v14  ;;  %3117 = vmatpush3.bf16.msra.mxu1 %v3614_v33 }
  0x2b   :  { %3124 = vmatprep.subr.bf16.mxu1 %v3370_v16 }
  0x2d   :  { %2885 = vmatmul.mubr.msk.f32.gmra.mrb[12].mxu1 %vm69_vm1, %v56_v21 }
  0x2e   :  { %2887 = vmatprep.mubr.msk.f32.mxu1 %vm69_vm1, %v57_v23 }
  0x31   :  { %2888 = vmatmul.mubr.msk.f32.gmra.mrb[14].mxu1 %vm69_vm1, %v58_v26 }
  0x32   :  { %2909 = vmatprep.mubr.msk.f32.mxu1 %vm3371_vm2, %v3372_v27 }
  0x35   :  { %2910 = vmatmul.mubr.f32.vlgmr.msra.gmra.mrb[16].mxu1 %v3372_v27 }
  0x36   :  { %3126 = vmatpush3.bf16.msra.mxu1 %v3601_v30  ;;  %2931 = vmatprep.mubr.msk.f32.mxu1 %vm3371_vm2, %v3372_v27 }
  0x37   :  { %3127 = vmatprep.subr.bf16.mxu1 %v3370_v16 }
  0x3a   :  { %3129 = vmatpush3.bf16.msra.mxu1 %v3614_v33 }
  0x3b   :  { %3136 = vmatprep.subr.bf16.mxu1 %v3370_v16 }
  0xd8   :  { %v2838_v34 = vpop.f32.mrb[0].mxu1 }
  0xd9   :  { %v2852_v35 = vpop.f32.mrb[0].mxu0  ;;  %v164_v38 = vpop.f32.mrb[1].mxu1 }
  0xda   :  { %v302_v37 = vadd.f32 %v2852_v35, %v2838_v34  ;;  %v296_v39 = vpop.f32.mrb[1].mxu0 }
  0xdb   :  { %v297_v40 = vadd.f32 %v296_v39, %v164_v38 }
  0xdc   :  { %v343_v41 = vadd.f32 %v2625_v36, %v302_v37  ;;  %v2841_v43 = vpop.f32.mrb[2].mxu1 }
  0xdd   :  { %v342_v42 = vadd.f32 %v2625_v36, %v297_v40  ;;  %v2855_v44 = vpop.f32.mrb[2].mxu0  ;;  %v174_v46 = vpop.f32.mrb[3].mxu1 }
  0xde   :  { %352 = vst.msk [vmem:[#allocation2 + $0x8] sm:$0xff] %vm350_vm3, %v343_v41  ;;  %v312_v45 = vadd.f32 %v2855_v44, %v2841_v43  ;;  %v306_v47 = vpop.f32.mrb[3].mxu0 }
  0xdf   :  { %351 = vst.msk [vmem:[#allocation2] sm:$0xff] %vm350_vm3, %v342_v42  ;;  %v307_v48 = vadd.f32 %v306_v47, %v174_v46 }
  0xe0   :  { %v345_v49 = vadd.f32 %v2625_v36, %v312_v45  ;;  %v2844_v51 = vpop.f32.mrb[4].mxu1 }
  0xe1   :  { %v344_v50 = vadd.f32 %v2625_v36, %v307_v48  ;;  %v2858_v52 = vpop.f32.mrb[4].mxu0  ;;  %v184_v54 = vpop.f32.mrb[5].mxu1 }
  0xe2   :  { %354 = vst.msk [vmem:[#allocation2 + $0x18] sm:$0xff] %vm350_vm3, %v345_v49  ;;  %v322_v53 = vadd.f32 %v2858_v52, %v2844_v51  ;;  %v316_v55 = vpop.f32.mrb[5].mxu0 }
  0xe3   :  { %353 = vst.msk [vmem:[#allocation2 + $0x10] sm:$0xff] %vm350_vm3, %v344_v50  ;;  %v317_v56 = vadd.f32 %v316_v55, %v184_v54 }
  0xe4   :  { %v347_v57 = vadd.f32 %v2625_v36, %v322_v53  ;;  %v2847_v59 = vpop.f32.mrb[6].mxu1 }
  0xe5   :  { %v346_v58 = vadd.f32 %v2625_v36, %v317_v56  ;;  %v2861_v60 = vpop.f32.mrb[6].mxu0  ;;  %v194_v62 = vpop.f32.mrb[7].mxu1 }
  0xe6   :  { %356 = vst.msk [vmem:[#allocation2 + $0x28] sm:$0xff] %vm350_vm3, %v347_v57  ;;  %v332_v61 = vadd.f32 %v2861_v60, %v2847_v59  ;;  %v326_v63 = vpop.f32.mrb[7].mxu0 }
  0xe7   :  { %355 = vst.msk [vmem:[#allocation2 + $0x20] sm:$0xff] %vm350_vm3, %v346_v58  ;;  %v327_v0 = vadd.f32 %v326_v63, %v194_v62 }
  0xe8   :  { %v349_v1 = vadd.f32 %v2625_v36, %v332_v61 }
  0xe9   :  { %v348_v2 = vadd.f32 %v2625_v36, %v327_v0  ;;  %v693_v3 = vpop.f32.mrb[8].mxu0  ;;  %v622_v36 = vld [vmem:[#allocation2] sm:$0xff] }
  0xea   :  { %358 = vst.msk [vmem:[#allocation2 + $0x38] sm:$0xff] %vm350_vm3, %v349_v1  ;;  %v2900_v4 = vpop.f32.mrb[9].mxu0  ;;  %v694_v32 = vadd.f32 %v3665_v31, %v693_v3 }
  0xeb   :  { %357 = vst.msk [vmem:[#allocation2 + $0x30] sm:$0xff] %vm350_vm3, %v348_v2 }
  0xec   :  { %v697_v37 = vadd.f32 %v694_v32, %v622_v36 }
  0xee   :  { %v2647_v39 = vmul.f32 -1.442695, %v697_v37 }
  0xf8   :  { %v2880_v6 = vpop.f32.mrb[8].mxu1 }
  0xf9   :  { %v585_v7 = vadd.f32 %v2880_v6, %v2644_v5  ;;  %v538_v8 = vpop.f32.mrb[9].mxu1 }
  0xfa   :  { %v584_v9 = vadd.f32 %v2644_v5, %v538_v8 }
  0xfb   :  { %593 = vst.msk [vmem:[#allocation3 + $0x8] sm:$0xff] %vm350_vm3, %v585_v7 }
  0xfc   :  { %592 = vst.msk [vmem:[#allocation3] sm:$0xff] %vm350_vm3, %v584_v9  ;;  %v2883_v10 = vpop.f32.mrb[10].mxu1 }
  0xfd   :  { %v587_v11 = vadd.f32 %v2883_v10, %v2644_v5  ;;  %v548_v12 = vpop.f32.mrb[11].mxu1 }
  0xfe   :  { %v586_v13 = vadd.f32 %v2644_v5, %v548_v12  ;;  %v830_v12 = vld [vmem:[#allocation2 + $0x8] sm:$0xff] }
  0xff   :  { %595 = vst.msk [vmem:[#allocation3 + $0x18] sm:$0xff] %vm350_vm3, %v587_v11 }
 0x100   :  { %594 = vst.msk [vmem:[#allocation3 + $0x10] sm:$0xff] %vm350_vm3, %v586_v13  ;;  %v2886_v14 = vpop.f32.mrb[12].mxu1 }
 0x101   :  { %v589_v17 = vadd.f32 %v2886_v14, %v2644_v5  ;;  %v558_v18 = vpop.f32.mrb[13].mxu1 }
 0x102   :  { %v588_v19 = vadd.f32 %v2644_v5, %v558_v18 }
 0x103   :  { %597 = vst.msk [vmem:[#allocation3 + $0x28] sm:$0xff] %vm350_vm3, %v589_v17 }
 0x104   :  { %596 = vst.msk [vmem:[#allocation3 + $0x20] sm:$0xff] %vm350_vm3, %v588_v19  ;;  %v2889_v20 = vpop.f32.mrb[14].mxu1 }
 0x105   :  { %v591_v21 = vadd.f32 %v2889_v20, %v2644_v5  ;;  %v568_v22 = vpop.f32.mrb[15].mxu1 }
 0x106   :  { %v590_v23 = vadd.f32 %v2644_v5, %v568_v22 }
 0x107   :  { %599 = vst.msk [vmem:[#allocation3 + $0x38] sm:$0xff] %vm350_vm3, %v591_v21 }
 0x108   :  { %598 = vst.msk [vmem:[#allocation3 + $0x30] sm:$0xff] %vm350_vm3, %v590_v23  ;;  %v790_v26 = vpop.f32.mrb[16].mxu1 }
 0x109   :  { %v791_v28 = vadd.f32 %v3657_v25, %v790_v26  ;;  %v2911_v29 = vpop.f32.mrb[17].mxu1 }
 0x10b   :  { %802 = vrot.lane.b32.xlu0 %v791_v28, %s3373_s21 }
 0x10e   :  { %v723_v34 = vld [vmem:[#allocation3 + $0x38] sm:$0xff] }
 0x10f   :  { %705 = vrot.lane.b32.xlu0 %v694_v32, %s3373_s21  ;;  %v794_v35 = vadd.f32 %v791_v28, %v723_v34  ;;  %v929_v10 = vld [vmem:[#allocation3 + $0x30] sm:$0xff] }
 0x111   :  { %v2648_v38 = vmul.f32 -1.442695, %v794_v35 }
 0x113   :  { %3250 = vpow2.f32 %v2648_v38 }
 0x114   :  { %3252 = vpow2.f32 %v2647_v39 }
 0x11d   :  { %v3251_v40 = vpop.eup %3250 }
 0x11e   :  { %v798_v41 = vadd.f32 1.0, %v3251_v40  ;;  %v3253_v42 = vpop.eup %3252 }
 0x11f   :  { %v701_v43 = vadd.f32 1.0, %v3253_v42 }
 0x120   :  { %3254 = vrcp.f32 %v798_v41 }
 0x121   :  { %3256 = vrcp.f32 %v701_v43 }
 0x12a   :  { %v3255_v44 = vpop.eup %3254 }
 0x12b   :  { %v3257_v47 = vpop.eup %3256  ;;  %v812_v56 = vsub.f32 1.0, %v3255_v44  ;;  %v818_v58 = vmul.f32 0.0, %v3255_v44 }
 0x12c   :  { %v715_v61 = vsub.f32 1.0, %v3257_v47  ;;  %v721_v63 = vmul.f32 0.0, %v3257_v47 }
 0x17d   :  { %v803_v45 = vpop.permute.xlu0 %802 }
 0x17e   :  { %v805_v46 = vmul.f32 %v3255_v44, %v803_v45 }
 0x180   :  { %807 = vrot.lane.b32.xlu1 %v805_v46, %s3373_s21 }
 0x181   :  { %v706_v48 = vpop.permute.xlu0 %705 }
 0x182   :  { %v708_v49 = vmul.f32 %v3257_v47, %v706_v48 }
 0x184   :  { %710 = vrot.lane.b32.xlu1 %v708_v49, %s3373_s21 }
 0x1f2   :  { %v808_v50 = vpop.permute.xlu1 %807 }
 0x1f3   :  { %v810_v51 = vadd.f32 %v808_v50, %v723_v34 }
 0x1f5   :  { %3258 = vtanh.f32 %v810_v51 }
 0x1f6   :  { %v711_v52 = vpop.permute.xlu1 %710 }
 0x1f7   :  { %v713_v53 = vadd.f32 %v711_v52, %v622_v36 }
 0x1f9   :  { %3260 = vtanh.f32 %v713_v53 }
 0x1ff   :  { %v3259_v54 = vpop.eup %3258 }
 0x200   :  { %814 = vrot.lane.b32.xlu0 %v3259_v54, %s3374_s5 }
 0x203   :  { %v3261_v55 = vpop.eup %3260 }
 0x204   :  { %717 = vrot.lane.b32.xlu1 %v3261_v55, %s3374_s5 }
 0x272   :  { %v815_v57 = vpop.permute.xlu0 %814 }
 0x273   :  { %v817_v59 = vmul.f32 %v815_v57, %v812_v56 }
 0x275   :  { %v3674_v60 = vadd.f32 %v818_v58, %v817_v59  ;;  %v1137_v58 = vld [vmem:[#allocation3 + $0x28] sm:$0xff] }
 0x276   :  { %v718_v62 = vpop.permute.xlu1 %717 }
 0x277   :  { %v720_v0 = vmul.f32 %v718_v62, %v715_v61  ;;  %826 = vrot.lane.b32.xlu0 %v3674_v60, %s3374_s5 }
 0x279   :  { %v3678_v1 = vadd.f32 %v721_v63, %v720_v0 }
 0x27b   :  { %821 = vrot.lane.b32.xlu1 %v3678_v1, %s3374_s5 }
 0x2e9   :  { %v827_v2 = vpop.permute.xlu0 %826 }
 0x2ea   :  { %829 = vst.msk [vmem:[#allocation5 + $0x38] sm:$0xff] %vm623_vm4, %v827_v2  ;;  %2932 = vmatmul.mubr.msk.f32.vlgmr.msra.gmra.mrb[18].mxu1 %vm623_vm4, %v827_v2 }
 0x2eb   :  { %3138 = vmatpush3.bf16.msra.mxu1 %v3601_v30  ;;  %2953 = vmatprep.mubr.msk.f32.mxu1 %vm3371_vm2, %v3372_v27 }
 0x2ec   :  { %3139 = vmatprep.subr.bf16.mxu1 %v3370_v16 }
 0x2ed   :  { %v822_v3 = vpop.permute.xlu1 %821 }
 0x2ee   :  { %824 = vst.msk [vmem:[#allocation4] sm:$0xff] %vm623_vm4, %v822_v3  ;;  %2921 = vmatmul.mubr.msk.f32.vlgmr.msra.gmra.mrb[10].mxu0 %vm623_vm4, %v822_v3 }
 0x2ef   :  { %3132 = vmatpush3.bf16.msra.mxu0 %v3526_v15  ;;  %3141 = vmatpush3.bf16.msra.mxu1 %v3614_v33 }
 0x2f0   :  { %3133 = vmatprep.subr.bf16.mxu0 %v3370_v16  ;;  %2942 = vmatprep.mubr.msk.f32.mxu0 %vm3371_vm2, %v3372_v27 }
 0x2f1   :  { %3148 = vmatprep.subr.bf16.mxu1 %v3370_v16 }
 0x2f3   :  { %3135 = vmatpush3.bf16.msra.mxu0 %v3556_v24 }
 0x2f4   :  { %3142 = vmatprep.subr.bf16.mxu0 %v3370_v16 }
 0x3bd   :  { %v998_v4 = vpop.f32.mrb[18].mxu1 }
 0x3be   :  { %v999_v5 = vadd.f32 %v3657_v25, %v998_v4  ;;  %v2933_v6 = vpop.f32.mrb[19].mxu1 }
 0x3c0   :  { %1010 = vrot.lane.b32.xlu0 %v999_v5, %s3373_s21  ;;  %v1002_v11 = vadd.f32 %v999_v5, %v929_v10 }
 0x3c1   :  { %v899_v7 = vpop.f32.mrb[10].mxu0 }
 0x3c2   :  { %v900_v8 = vadd.f32 %v3665_v31, %v899_v7  ;;  %v2922_v9 = vpop.f32.mrb[11].mxu0  ;;  %v2652_v13 = vmul.f32 -1.442695, %v1002_v11 }
 0x3c4   :  { %911 = vrot.lane.b32.xlu1 %v900_v8, %s3373_s21  ;;  %v903_v14 = vadd.f32 %v900_v8, %v830_v12  ;;  %3262 = vpow2.f32 %v2652_v13 }
 0x3c6   :  { %v2650_v17 = vmul.f32 -1.442695, %v903_v14 }
 0x3c8   :  { %3264 = vpow2.f32 %v2650_v17 }
 0x3ce   :  { %v3263_v18 = vpop.eup %3262 }
 0x3cf   :  { %v1006_v19 = vadd.f32 1.0, %v3263_v18 }
 0x3d1   :  { %3266 = vrcp.f32 %v1006_v19 }
 0x3d2   :  { %v3265_v20 = vpop.eup %3264 }
 0x3d3   :  { %v907_v21 = vadd.f32 1.0, %v3265_v20 }
 0x3d5   :  { %3268 = vrcp.f32 %v907_v21 }
 0x3db   :  { %v3267_v22 = vpop.eup %3266 }
 0x3dc   :  { %v1020_v40 = vsub.f32 1.0, %v3267_v22  ;;  %v1026_v42 = vmul.f32 %v3267_v22, %v3674_v60  ;;  %v1038_v60 = vld [vmem:[#allocation2 + $0x10] sm:$0xff] }
 0x3df   :  { %v3269_v28 = vpop.eup %3268 }
 0x3e0   :  { %v921_v45 = vsub.f32 1.0, %v3269_v28  ;;  %v927_v47 = vmul.f32 %v3269_v28, %v3678_v1 }
 0x432   :  { %v1011_v23 = vpop.permute.xlu0 %1010 }
 0x433   :  { %v1013_v26 = vmul.f32 %v3267_v22, %v1011_v23 }
 0x435   :  { %1015 = vrot.lane.b32.xlu0 %v1013_v26, %s3373_s21 }
 0x436   :  { %v912_v29 = vpop.permute.xlu1 %911 }
 0x437   :  { %v914_v32 = vmul.f32 %v3269_v28, %v912_v29 }
 0x439   :  { %916 = vrot.lane.b32.xlu1 %v914_v32, %s3373_s21 }
 0x4a7   :  { %v1016_v34 = vpop.permute.xlu0 %1015 }
 0x4a8   :  { %v1018_v35 = vadd.f32 %v1016_v34, %v929_v10 }
 0x4aa   :  { %3270 = vtanh.f32 %v1018_v35 }
 0x4ab   :  { %v917_v36 = vpop.permute.xlu1 %916 }
 0x4ac   :  { %v919_v37 = vadd.f32 %v917_v36, %v830_v12 }
 0x4ae   :  { %3272 = vtanh.f32 %v919_v37 }
 0x4b4   :  { %v3271_v38 = vpop.eup %3270 }
 0x4b5   :  { %1022 = vrot.lane.b32.xlu0 %v3271_v38, %s3374_s5 }
 0x4b8   :  { %v3273_v39 = vpop.eup %3272 }
 0x4b9   :  { %923 = vrot.lane.b32.xlu1 %v3273_v39, %s3374_s5 }
 0x527   :  { %v1023_v41 = vpop.permute.xlu0 %1022 }
 0x528   :  { %v1025_v43 = vmul.f32 %v1023_v41, %v1020_v40 }
 0x52a   :  { %v3707_v44 = vadd.f32 %v1026_v42, %v1025_v43  ;;  %v1345_v42 = vld [vmem:[#allocation3 + $0x20] sm:$0xff] }
 0x52b   :  { %v924_v46 = vpop.permute.xlu1 %923 }
 0x52c   :  { %v926_v48 = vmul.f32 %v924_v46, %v921_v45  ;;  %1034 = vrot.lane.b32.xlu0 %v3707_v44, %s3374_s5 }
 0x52e   :  { %v3712_v49 = vadd.f32 %v927_v47, %v926_v48 }
 0x530   :  { %1029 = vrot.lane.b32.xlu1 %v3712_v49, %s3374_s5 }
 0x59e   :  { %v1035_v50 = vpop.permute.xlu0 %1034 }
 0x59f   :  { %1037 = vst.msk [vmem:[#allocation5 + $0x30] sm:$0xff] %vm623_vm4, %v1035_v50  ;;  %2954 = vmatmul.mubr.msk.f32.vlgmr.msra.gmra.mrb[20].mxu1 %vm623_vm4, %v1035_v50 }
 0x5a0   :  { %3150 = vmatpush3.bf16.msra.mxu1 %v3601_v30  ;;  %2975 = vmatprep.mubr.msk.f32.mxu1 %vm3371_vm2, %v3372_v27 }
 0x5a1   :  { %3151 = vmatprep.subr.bf16.mxu1 %v3370_v16 }
 0x5a2   :  { %v1030_v51 = vpop.permute.xlu1 %1029 }
 0x5a3   :  { %1032 = vst.msk [vmem:[#allocation4 + $0x8] sm:$0xff] %vm623_vm4, %v1030_v51  ;;  %2943 = vmatmul.mubr.msk.f32.vlgmr.msra.gmra.mrb[12].mxu0 %vm623_vm4, %v1030_v51 }
 0x5a4   :  { %3144 = vmatpush3.bf16.msra.mxu0 %v3526_v15  ;;  %3153 = vmatpush3.bf16.msra.mxu1 %v3614_v33 }
 0x5a5   :  { %3145 = vmatprep.subr.bf16.mxu0 %v3370_v16  ;;  %2964 = vmatprep.mubr.msk.f32.mxu0 %vm3371_vm2, %v3372_v27 }
 0x5a6   :  { %3160 = vmatprep.subr.bf16.mxu1 %v3370_v16 }
 0x5a8   :  { %3147 = vmatpush3.bf16.msra.mxu0 %v3556_v24 }
 0x5a9   :  { %3154 = vmatprep.subr.bf16.mxu0 %v3370_v16 }
 0x672   :  { %v1206_v52 = vpop.f32.mrb[20].mxu1 }
 0x673   :  { %v1207_v53 = vadd.f32 %v3657_v25, %v1206_v52  ;;  %v2955_v54 = vpop.f32.mrb[21].mxu1 }
 0x675   :  { %1218 = vrot.lane.b32.xlu0 %v1207_v53, %s3373_s21  ;;  %v1210_v59 = vadd.f32 %v1207_v53, %v1137_v58 }
 0x676   :  { %v1107_v55 = vpop.f32.mrb[12].mxu0 }
 0x677   :  { %v1108_v56 = vadd.f32 %v3665_v31, %v1107_v55  ;;  %v2944_v57 = vpop.f32.mrb[13].mxu0  ;;  %v2656_v61 = vmul.f32 -1.442695, %v1210_v59 }
 0x679   :  { %1119 = vrot.lane.b32.xlu1 %v1108_v56, %s3373_s21  ;;  %v1111_v62 = vadd.f32 %v1108_v56, %v1038_v60  ;;  %3274 = vpow2.f32 %v2656_v61 }
 0x67b   :  { %v2654_v63 = vmul.f32 -1.442695, %v1111_v62 }
 0x67d   :  { %3276 = vpow2.f32 %v2654_v63 }
 0x683   :  { %v3275_v0 = vpop.eup %3274 }
 0x684   :  { %v1214_v1 = vadd.f32 1.0, %v3275_v0 }
 0x686   :  { %3278 = vrcp.f32 %v1214_v1 }
 0x687   :  { %v3277_v2 = vpop.eup %3276 }
 0x688   :  { %v1115_v3 = vadd.f32 1.0, %v3277_v2 }
 0x68a   :  { %3280 = vrcp.f32 %v1115_v3 }
 0x690   :  { %v3279_v4 = vpop.eup %3278 }
 0x691   :  { %v1228_v18 = vsub.f32 1.0, %v3279_v4  ;;  %v1234_v20 = vmul.f32 %v3279_v4, %v3707_v44  ;;  %v1246_v44 = vld [vmem:[#allocation2 + $0x18] sm:$0xff] }
 0x694   :  { %v3281_v7 = vpop.eup %3280 }
 0x695   :  { %v1129_v23 = vsub.f32 1.0, %v3281_v7  ;;  %v1135_v28 = vmul.f32 %v3281_v7, %v3712_v49 }
 0x6e7   :  { %v1219_v5 = vpop.permute.xlu0 %1218 }
 0x6e8   :  { %v1221_v6 = vmul.f32 %v3279_v4, %v1219_v5 }
 0x6ea   :  { %1223 = vrot.lane.b32.xlu0 %v1221_v6, %s3373_s21 }
 0x6eb   :  { %v1120_v8 = vpop.permute.xlu1 %1119 }
 0x6ec   :  { %v1122_v9 = vmul.f32 %v3281_v7, %v1120_v8 }
 0x6ee   :  { %1124 = vrot.lane.b32.xlu1 %v1122_v9, %s3373_s21 }
 0x75c   :  { %v1224_v10 = vpop.permute.xlu0 %1223 }
 0x75d   :  { %v1226_v11 = vadd.f32 %v1224_v10, %v1137_v58 }
 0x75f   :  { %3282 = vtanh.f32 %v1226_v11 }
 0x760   :  { %v1125_v12 = vpop.permute.xlu1 %1124 }
 0x761   :  { %v1127_v13 = vadd.f32 %v1125_v12, %v1038_v60 }
 0x763   :  { %3284 = vtanh.f32 %v1127_v13 }
 0x769   :  { %v3283_v14 = vpop.eup %3282 }
 0x76a   :  { %1230 = vrot.lane.b32.xlu0 %v3283_v14, %s3374_s5 }
 0x76d   :  { %v3285_v17 = vpop.eup %3284 }
 0x76e   :  { %1131 = vrot.lane.b32.xlu1 %v3285_v17, %s3374_s5 }
 0x7dc   :  { %v1231_v19 = vpop.permute.xlu0 %1230 }
 0x7dd   :  { %v1233_v21 = vmul.f32 %v1231_v19, %v1228_v18 }
 0x7df   :  { %v3741_v22 = vadd.f32 %v1234_v20, %v1233_v21  ;;  %v1553_v20 = vld [vmem:[#allocation3 + $0x18] sm:$0xff] }
 0x7e0   :  { %v1132_v26 = vpop.permute.xlu1 %1131 }
 0x7e1   :  { %v1134_v29 = vmul.f32 %v1132_v26, %v1129_v23  ;;  %1242 = vrot.lane.b32.xlu0 %v3741_v22, %s3374_s5 }
 0x7e3   :  { %v3746_v32 = vadd.f32 %v1135_v28, %v1134_v29 }
 0x7e5   :  { %1237 = vrot.lane.b32.xlu1 %v3746_v32, %s3374_s5 }
 0x853   :  { %v1243_v34 = vpop.permute.xlu0 %1242 }
 0x854   :  { %1245 = vst.msk [vmem:[#allocation5 + $0x28] sm:$0xff] %vm623_vm4, %v1243_v34  ;;  %2976 = vmatmul.mubr.msk.f32.vlgmr.msra.gmra.mrb[22].mxu1 %vm623_vm4, %v1243_v34 }
 0x855   :  { %3162 = vmatpush3.bf16.msra.mxu1 %v3601_v30  ;;  %2997 = vmatprep.mubr.msk.f32.mxu1 %vm3371_vm2, %v3372_v27 }
 0x856   :  { %3163 = vmatprep.subr.bf16.mxu1 %v3370_v16 }
 0x857   :  { %v1238_v35 = vpop.permute.xlu1 %1237 }
 0x858   :  { %1240 = vst.msk [vmem:[#allocation4 + $0x10] sm:$0xff] %vm623_vm4, %v1238_v35  ;;  %2965 = vmatmul.mubr.msk.f32.vlgmr.msra.gmra.mrb[14].mxu0 %vm623_vm4, %v1238_v35 }
 0x859   :  { %3156 = vmatpush3.bf16.msra.mxu0 %v3526_v15  ;;  %3165 = vmatpush3.bf16.msra.mxu1 %v3614_v33 }
 0x85a   :  { %3157 = vmatprep.subr.bf16.mxu0 %v3370_v16  ;;  %2986 = vmatprep.mubr.msk.f32.mxu0 %vm3371_vm2, %v3372_v27 }
 0x85b   :  { %3172 = vmatprep.subr.bf16.mxu1 %v3370_v16 }
 0x85d   :  { %3159 = vmatpush3.bf16.msra.mxu0 %v3556_v24 }
 0x85e   :  { %3166 = vmatprep.subr.bf16.mxu0 %v3370_v16 }
 0x927   :  { %v1414_v36 = vpop.f32.mrb[22].mxu1 }
 0x928   :  { %v1415_v37 = vadd.f32 %v3657_v25, %v1414_v36  ;;  %v2977_v38 = vpop.f32.mrb[23].mxu1 }
 0x92a   :  { %1426 = vrot.lane.b32.xlu0 %v1415_v37, %s3373_s21  ;;  %v1418_v43 = vadd.f32 %v1415_v37, %v1345_v42 }
 0x92b   :  { %v1315_v39 = vpop.f32.mrb[14].mxu0 }
 0x92c   :  { %v1316_v40 = vadd.f32 %v3665_v31, %v1315_v39  ;;  %v2966_v41 = vpop.f32.mrb[15].mxu0  ;;  %v2660_v45 = vmul.f32 -1.442695, %v1418_v43 }
 0x92e   :  { %1327 = vrot.lane.b32.xlu1 %v1316_v40, %s3373_s21  ;;  %v1319_v46 = vadd.f32 %v1316_v40, %v1246_v44  ;;  %3286 = vpow2.f32 %v2660_v45 }
 0x930   :  { %v2658_v47 = vmul.f32 -1.442695, %v1319_v46 }
 0x932   :  { %3288 = vpow2.f32 %v2658_v47 }
 0x938   :  { %v3287_v48 = vpop.eup %3286 }
 0x939   :  { %v1422_v49 = vadd.f32 1.0, %v3287_v48 }
 0x93b   :  { %3290 = vrcp.f32 %v1422_v49 }
 0x93c   :  { %v3289_v50 = vpop.eup %3288 }
 0x93d   :  { %v1323_v51 = vadd.f32 1.0, %v3289_v50 }
 0x93f   :  { %3292 = vrcp.f32 %v1323_v51 }
 0x945   :  { %v3291_v52 = vpop.eup %3290 }
 0x946   :  { %v1436_v0 = vsub.f32 1.0, %v3291_v52  ;;  %v1442_v2 = vmul.f32 %v3291_v52, %v3741_v22  ;;  %v1454_v22 = vld [vmem:[#allocation2 + $0x20] sm:$0xff] }
 0x949   :  { %v3293_v55 = vpop.eup %3292 }
 0x94a   :  { %v1337_v5 = vsub.f32 1.0, %v3293_v55  ;;  %v1343_v7 = vmul.f32 %v3293_v55, %v3746_v32 }
 0x99c   :  { %v1427_v53 = vpop.permute.xlu0 %1426 }
 0x99d   :  { %v1429_v54 = vmul.f32 %v3291_v52, %v1427_v53 }
 0x99f   :  { %1431 = vrot.lane.b32.xlu0 %v1429_v54, %s3373_s21 }
 0x9a0   :  { %v1328_v56 = vpop.permute.xlu1 %1327 }
 0x9a1   :  { %v1330_v57 = vmul.f32 %v3293_v55, %v1328_v56 }
 0x9a3   :  { %1332 = vrot.lane.b32.xlu1 %v1330_v57, %s3373_s21 }
 0xa11   :  { %v1432_v58 = vpop.permute.xlu0 %1431 }
 0xa12   :  { %v1434_v59 = vadd.f32 %v1432_v58, %v1345_v42 }
 0xa14   :  { %3294 = vtanh.f32 %v1434_v59 }
 0xa15   :  { %v1333_v60 = vpop.permute.xlu1 %1332 }
 0xa16   :  { %v1335_v61 = vadd.f32 %v1333_v60, %v1246_v44 }
 0xa18   :  { %3296 = vtanh.f32 %v1335_v61 }
 0xa1e   :  { %v3295_v62 = vpop.eup %3294 }
 0xa1f   :  { %1438 = vrot.lane.b32.xlu0 %v3295_v62, %s3374_s5 }
 0xa22   :  { %v3297_v63 = vpop.eup %3296 }
 0xa23   :  { %1339 = vrot.lane.b32.xlu1 %v3297_v63, %s3374_s5 }
 0xa91   :  { %v1439_v1 = vpop.permute.xlu0 %1438 }
 0xa92   :  { %v1441_v3 = vmul.f32 %v1439_v1, %v1436_v0 }
 0xa94   :  { %v3775_v4 = vadd.f32 %v1442_v2, %v1441_v3  ;;  %v1761_v2 = vld [vmem:[#allocation3 + $0x10] sm:$0xff] }
 0xa95   :  { %v1340_v6 = vpop.permute.xlu1 %1339 }
 0xa96   :  { %v1342_v8 = vmul.f32 %v1340_v6, %v1337_v5  ;;  %1450 = vrot.lane.b32.xlu0 %v3775_v4, %s3374_s5 }
 0xa98   :  { %v3780_v9 = vadd.f32 %v1343_v7, %v1342_v8 }
 0xa9a   :  { %1445 = vrot.lane.b32.xlu1 %v3780_v9, %s3374_s5 }
 0xb08   :  { %v1451_v10 = vpop.permute.xlu0 %1450 }
 0xb09   :  { %1453 = vst.msk [vmem:[#allocation5 + $0x20] sm:$0xff] %vm623_vm4, %v1451_v10  ;;  %2998 = vmatmul.mubr.msk.f32.vlgmr.msra.gmra.mrb[24].mxu1 %vm623_vm4, %v1451_v10 }
 0xb0a   :  { %3174 = vmatpush3.bf16.msra.mxu1 %v3601_v30  ;;  %3019 = vmatprep.mubr.msk.f32.mxu1 %vm3371_vm2, %v3372_v27 }
 0xb0b   :  { %3175 = vmatprep.subr.bf16.mxu1 %v3370_v16 }
 0xb0c   :  { %v1446_v11 = vpop.permute.xlu1 %1445 }
 0xb0d   :  { %1448 = vst.msk [vmem:[#allocation4 + $0x18] sm:$0xff] %vm623_vm4, %v1446_v11  ;;  %2987 = vmatmul.mubr.msk.f32.vlgmr.msra.gmra.mrb[16].mxu0 %vm623_vm4, %v1446_v11 }
 0xb0e   :  { %3168 = vmatpush3.bf16.msra.mxu0 %v3526_v15  ;;  %3177 = vmatpush3.bf16.msra.mxu1 %v3614_v33 }
 0xb0f   :  { %3169 = vmatprep.subr.bf16.mxu0 %v3370_v16  ;;  %3008 = vmatprep.mubr.msk.f32.mxu0 %vm3371_vm2, %v3372_v27 }
 0xb10   :  { %3184 = vmatprep.subr.bf16.mxu1 %v3370_v16 }
 0xb12   :  { %3171 = vmatpush3.bf16.msra.mxu0 %v3556_v24 }
 0xb13   :  { %3178 = vmatprep.subr.bf16.mxu0 %v3370_v16 }
 0xbdc   :  { %v1622_v12 = vpop.f32.mrb[24].mxu1 }
 0xbdd   :  { %v1623_v13 = vadd.f32 %v3657_v25, %v1622_v12  ;;  %v2999_v14 = vpop.f32.mrb[25].mxu1 }
 0xbdf   :  { %1634 = vrot.lane.b32.xlu0 %v1623_v13, %s3373_s21  ;;  %v1626_v21 = vadd.f32 %v1623_v13, %v1553_v20 }
 0xbe0   :  { %v1523_v17 = vpop.f32.mrb[16].mxu0 }
 0xbe1   :  { %v1524_v18 = vadd.f32 %v3665_v31, %v1523_v17  ;;  %v2988_v19 = vpop.f32.mrb[17].mxu0  ;;  %v2664_v23 = vmul.f32 -1.442695, %v1626_v21 }
 0xbe3   :  { %1535 = vrot.lane.b32.xlu1 %v1524_v18, %s3373_s21  ;;  %v1527_v26 = vadd.f32 %v1524_v18, %v1454_v22  ;;  %3298 = vpow2.f32 %v2664_v23 }
 0xbe5   :  { %v2662_v28 = vmul.f32 -1.442695, %v1527_v26 }
 0xbe7   :  { %3300 = vpow2.f32 %v2662_v28 }
 0xbed   :  { %v3299_v29 = vpop.eup %3298 }
 0xbee   :  { %v1630_v32 = vadd.f32 1.0, %v3299_v29 }
 0xbf0   :  { %3302 = vrcp.f32 %v1630_v32 }
 0xbf1   :  { %v3301_v34 = vpop.eup %3300 }
 0xbf2   :  { %v1531_v35 = vadd.f32 1.0, %v3301_v34 }
 0xbf4   :  { %3304 = vrcp.f32 %v1531_v35 }
 0xbfa   :  { %v3303_v36 = vpop.eup %3302 }
 0xbfb   :  { %v1644_v48 = vsub.f32 1.0, %v3303_v36  ;;  %v1650_v50 = vmul.f32 %v3303_v36, %v3775_v4  ;;  %v1662_v4 = vld [vmem:[#allocation2 + $0x28] sm:$0xff] }
 0xbfe   :  { %v3305_v39 = vpop.eup %3304 }
 0xbff   :  { %v1545_v53 = vsub.f32 1.0, %v3305_v39  ;;  %v1551_v55 = vmul.f32 %v3305_v39, %v3780_v9 }
 0xc51   :  { %v1635_v37 = vpop.permute.xlu0 %1634 }
 0xc52   :  { %v1637_v38 = vmul.f32 %v3303_v36, %v1635_v37 }
 0xc54   :  { %1639 = vrot.lane.b32.xlu0 %v1637_v38, %s3373_s21 }
 0xc55   :  { %v1536_v40 = vpop.permute.xlu1 %1535 }
 0xc56   :  { %v1538_v41 = vmul.f32 %v3305_v39, %v1536_v40 }
 0xc58   :  { %1540 = vrot.lane.b32.xlu1 %v1538_v41, %s3373_s21 }
 0xcc6   :  { %v1640_v42 = vpop.permute.xlu0 %1639 }
 0xcc7   :  { %v1642_v43 = vadd.f32 %v1640_v42, %v1553_v20 }
 0xcc9   :  { %3306 = vtanh.f32 %v1642_v43 }
 0xcca   :  { %v1541_v44 = vpop.permute.xlu1 %1540 }
 0xccb   :  { %v1543_v45 = vadd.f32 %v1541_v44, %v1454_v22 }
 0xccd   :  { %3308 = vtanh.f32 %v1543_v45 }
 0xcd3   :  { %v3307_v46 = vpop.eup %3306 }
 0xcd4   :  { %1646 = vrot.lane.b32.xlu0 %v3307_v46, %s3374_s5 }
 0xcd7   :  { %v3309_v47 = vpop.eup %3308 }
 0xcd8   :  { %1547 = vrot.lane.b32.xlu1 %v3309_v47, %s3374_s5 }
 0xd46   :  { %v1647_v49 = vpop.permute.xlu0 %1646 }
 0xd47   :  { %v1649_v51 = vmul.f32 %v1647_v49, %v1644_v48 }
 0xd49   :  { %v3809_v52 = vadd.f32 %v1650_v50, %v1649_v51 }
 0xd4a   :  { %v1548_v54 = vpop.permute.xlu1 %1547 }
 0xd4b   :  { %v1550_v56 = vmul.f32 %v1548_v54, %v1545_v53  ;;  %1658 = vrot.lane.b32.xlu0 %v3809_v52, %s3374_s5 }
 0xd4d   :  { %v3814_v57 = vadd.f32 %v1551_v55, %v1550_v56 }
 0xd4f   :  { %1653 = vrot.lane.b32.xlu1 %v3814_v57, %s3374_s5 }
 0xdbd   :  { %v1659_v58 = vpop.permute.xlu0 %1658 }
 0xdbe   :  { %1661 = vst.msk [vmem:[#allocation5 + $0x18] sm:$0xff] %vm623_vm4, %v1659_v58  ;;  %3020 = vmatmul.mubr.msk.f32.vlgmr.msra.gmra.mrb[26].mxu1 %vm623_vm4, %v1659_v58 }
 0xdbf   :  { %3186 = vmatpush3.bf16.msra.mxu1 %v3601_v30  ;;  %3041 = vmatprep.mubr.msk.f32.mxu1 %vm3371_vm2, %v3372_v27 }
 0xdc0   :  { %3187 = vmatprep.subr.bf16.mxu1 %v3370_v16 }
 0xdc1   :  { %v1654_v59 = vpop.permute.xlu1 %1653 }
 0xdc2   :  { %1656 = vst.msk [vmem:[#allocation4 + $0x20] sm:$0xff] %vm623_vm4, %v1654_v59  ;;  %3009 = vmatmul.mubr.msk.f32.vlgmr.msra.gmra.mrb[18].mxu0 %vm623_vm4, %v1654_v59 }
 0xdc3   :  { %3180 = vmatpush3.bf16.msra.mxu0 %v3526_v15  ;;  %3189 = vmatpush3.bf16.msra.mxu1 %v3614_v33 }
 0xdc4   :  { %3181 = vmatprep.subr.bf16.mxu0 %v3370_v16  ;;  %3030 = vmatprep.mubr.msk.f32.mxu0 %vm3371_vm2, %v3372_v27 }
 0xdc5   :  { %3196 = vmatprep.subr.bf16.mxu1 %v3370_v16 }
 0xdc7   :  { %3183 = vmatpush3.bf16.msra.mxu0 %v3556_v24 }
 0xdc8   :  { %3190 = vmatprep.subr.bf16.mxu0 %v3370_v16 }
 0xe91   :  { %v1830_v60 = vpop.f32.mrb[26].mxu1 }
 0xe92   :  { %v1831_v61 = vadd.f32 %v3657_v25, %v1830_v60  ;;  %v3021_v62 = vpop.f32.mrb[27].mxu1 }
 0xe94   :  { %1842 = vrot.lane.b32.xlu0 %v1831_v61, %s3373_s21  ;;  %v1834_v3 = vadd.f32 %v1831_v61, %v1761_v2 }
 0xe95   :  { %v1731_v63 = vpop.f32.mrb[18].mxu0 }
 0xe96   :  { %v1732_v0 = vadd.f32 %v3665_v31, %v1731_v63  ;;  %v3010_v1 = vpop.f32.mrb[19].mxu0  ;;  %v2668_v5 = vmul.f32 -1.442695, %v1834_v3 }
 0xe98   :  { %1743 = vrot.lane.b32.xlu1 %v1732_v0, %s3373_s21  ;;  %v1735_v6 = vadd.f32 %v1732_v0, %v1662_v4  ;;  %3310 = vpow2.f32 %v2668_v5 }
 0xe9a   :  { %v2666_v7 = vmul.f32 -1.442695, %v1735_v6 }
 0xe9c   :  { %3312 = vpow2.f32 %v2666_v7 }
 0xea2   :  { %v3311_v8 = vpop.eup %3310 }
 0xea3   :  { %v1838_v9 = vadd.f32 1.0, %v3311_v8 }
 0xea5   :  { %3314 = vrcp.f32 %v1838_v9 }
 0xea6   :  { %v3313_v10 = vpop.eup %3312 }
 0xea7   :  { %v1739_v11 = vadd.f32 1.0, %v3313_v10 }
 0xea9   :  { %3316 = vrcp.f32 %v1739_v11 }
 0xeaf   :  { %v3315_v12 = vpop.eup %3314 }
 0xeb0   :  { %v1852_v29 = vsub.f32 1.0, %v3315_v12  ;;  %v1858_v34 = vmul.f32 %v3315_v12, %v3809_v52 }
 0xeb3   :  { %v3317_v17 = vpop.eup %3316 }
 0xeb4   :  { %v1753_v37 = vsub.f32 1.0, %v3317_v17  ;;  %v1759_v39 = vmul.f32 %v3317_v17, %v3814_v57 }
 0xf06   :  { %v1843_v13 = vpop.permute.xlu0 %1842 }
 0xf07   :  { %v1845_v14 = vmul.f32 %v3315_v12, %v1843_v13 }
 0xf09   :  { %1847 = vrot.lane.b32.xlu0 %v1845_v14, %s3373_s21 }
 0xf0a   :  { %v1744_v18 = vpop.permute.xlu1 %1743 }
 0xf0b   :  { %v1746_v19 = vmul.f32 %v3317_v17, %v1744_v18 }
 0xf0d   :  { %1748 = vrot.lane.b32.xlu1 %v1746_v19, %s3373_s21 }
 0xf7b   :  { %v1848_v20 = vpop.permute.xlu0 %1847 }
 0xf7c   :  { %v1850_v21 = vadd.f32 %v1848_v20, %v1761_v2 }
 0xf7e   :  { %3318 = vtanh.f32 %v1850_v21 }
 0xf7f   :  { %v1749_v22 = vpop.permute.xlu1 %1748 }
 0xf80   :  { %v1751_v23 = vadd.f32 %v1749_v22, %v1662_v4  ;;  %v2177_v22 = vld [vmem:[#allocation3] sm:$0xff] }
 0xf82   :  { %3320 = vtanh.f32 %v1751_v23 }
 0xf88   :  { %v3319_v26 = vpop.eup %3318 }
 0xf89   :  { %1854 = vrot.lane.b32.xlu0 %v3319_v26, %s3374_s5  ;;  %v2078_v26 = vld [vmem:[#allocation2 + $0x38] sm:$0xff] }
 0xf8c   :  { %v3321_v28 = vpop.eup %3320 }
 0xf8d   :  { %1755 = vrot.lane.b32.xlu1 %v3321_v28, %s3374_s5 }
 0xffb   :  { %v1855_v32 = vpop.permute.xlu0 %1854 }
 0xffc   :  { %v1857_v35 = vmul.f32 %v1855_v32, %v1852_v29 }
 0xffe   :  { %v3843_v36 = vadd.f32 %v1858_v34, %v1857_v35 }
 0xfff   :  { %v1756_v38 = vpop.permute.xlu1 %1755 }
0x1000   :  { %v1758_v40 = vmul.f32 %v1756_v38, %v1753_v37  ;;  %1866 = vrot.lane.b32.xlu0 %v3843_v36, %s3374_s5 }
0x1002   :  { %v3848_v41 = vadd.f32 %v1759_v39, %v1758_v40 }
0x1004   :  { %1861 = vrot.lane.b32.xlu1 %v3848_v41, %s3374_s5 }
0x1072   :  { %v1867_v42 = vpop.permute.xlu0 %1866 }
0x1073   :  { %1869 = vst.msk [vmem:[#allocation5 + $0x10] sm:$0xff] %vm623_vm4, %v1867_v42  ;;  %3042 = vmatmul.mubr.msk.f32.vlgmr.msra.gmra.mrb[28].mxu1 %vm623_vm4, %v1867_v42 }
0x1074   :  { %3198 = vmatpush3.bf16.msra.mxu1 %v3601_v30  ;;  %3063 = vmatprep.mubr.msk.f32.mxu1 %vm3371_vm2, %v3372_v27 }
0x1075   :  { %3199 = vmatprep.subr.bf16.mxu1 %v3370_v16 }
0x1076   :  { %v1862_v43 = vpop.permute.xlu1 %1861 }
0x1077   :  { %1864 = vst.msk [vmem:[#allocation4 + $0x28] sm:$0xff] %vm623_vm4, %v1862_v43  ;;  %3031 = vmatmul.mubr.msk.f32.vlgmr.msra.gmra.mrb[20].mxu0 %vm623_vm4, %v1862_v43 }
0x1078   :  { %3192 = vmatpush3.bf16.msra.mxu0 %v3526_v15  ;;  %3201 = vmatpush3.bf16.msra.mxu1 %v3614_v33  ;;  %v1969_v15 = vld [vmem:[#allocation3 + $0x8] sm:$0xff] }
0x1079   :  { %3193 = vmatprep.subr.bf16.mxu0 %v3370_v16  ;;  %3052 = vmatprep.mubr.msk.f32.mxu0 %vm3371_vm2, %v3372_v27  ;;  %v1870_v16 = vld [vmem:[#allocation2 + $0x30] sm:$0xff] }
0x107c   :  { %3195 = vmatpush3.bf16.msra.mxu0 %v3556_v24 }
0x1146   :  { %v2038_v30 = vpop.f32.mrb[28].mxu1 }
0x1147   :  { %v2039_v44 = vadd.f32 %v3657_v25, %v2038_v30  ;;  %v3043_v45 = vpop.f32.mrb[29].mxu1 }
0x1149   :  { %2050 = vrot.lane.b32.xlu0 %v2039_v44, %s3373_s21  ;;  %v2042_v33 = vadd.f32 %v2039_v44, %v1969_v15 }
0x114a   :  { %v1939_v46 = vpop.f32.mrb[20].mxu0 }
0x114b   :  { %v1940_v47 = vadd.f32 %v3665_v31, %v1939_v46  ;;  %v3032_v48 = vpop.f32.mrb[21].mxu0  ;;  %v2672_v49 = vmul.f32 -1.442695, %v2042_v33  ;;  %v2308_v33 = vld [vmem:[%s3970_s13 + $0x10] sm:$0xff] }
0x114c   :  { %v2307_v48 = vld [vmem:[%s3970_s13 + $0x8] sm:$0xff] }
0x114d   :  { %1951 = vrot.lane.b32.xlu1 %v1940_v47, %s3373_s21  ;;  %v1943_v50 = vadd.f32 %v1940_v47, %v1870_v16  ;;  %3322 = vpow2.f32 %v2672_v49  ;;  %v2306_v47 = vld [vmem:[%s3970_s13] sm:$0xff] }
0x114f   :  { %v2670_v27 = vmul.f32 -1.442695, %v1943_v50 }
0x1151   :  { %3324 = vpow2.f32 %v2670_v27 }
0x1157   :  { %v3323_v24 = vpop.eup %3322 }
0x1158   :  { %v2046_v51 = vadd.f32 1.0, %v3323_v24 }
0x115a   :  { %3326 = vrcp.f32 %v2046_v51 }
0x115b   :  { %v3325_v52 = vpop.eup %3324 }
0x115c   :  { %v1947_v53 = vadd.f32 1.0, %v3325_v52  ;;  %v2294_v52 = vld [vmem:[%s3969_s12] sm:$0xff] }
0x115e   :  { %3328 = vrcp.f32 %v1947_v53  ;;  %v2295_v53 = vld [vmem:[%s3969_s12 + $0x8] sm:$0xff] }
0x1164   :  { %v3327_v54 = vpop.eup %3326 }
0x1165   :  { %v2060_v2 = vsub.f32 1.0, %v3327_v54  ;;  %v2066_v4 = vmul.f32 %v3327_v54, %v3843_v36 }
0x1168   :  { %v3329_v57 = vpop.eup %3328 }
0x1169   :  { %v1961_v7 = vsub.f32 1.0, %v3329_v57  ;;  %v1967_v9 = vmul.f32 %v3329_v57, %v3848_v41 }
0x11bb   :  { %v2051_v55 = vpop.permute.xlu0 %2050 }
0x11bc   :  { %v2053_v56 = vmul.f32 %v3327_v54, %v2051_v55  ;;  %v3210_v54 = vpack.c.bf16 %v2295_v53, %v2294_v52 }
0x11be   :  { %2055 = vrot.lane.b32.xlu0 %v2053_v56, %s3373_s21 }
0x11bf   :  { %v1952_v58 = vpop.permute.xlu1 %1951 }
0x11c0   :  { %v1954_v59 = vmul.f32 %v3329_v57, %v1952_v58 }
0x11c2   :  { %1956 = vrot.lane.b32.xlu1 %v1954_v59, %s3373_s21 }
0x1230   :  { %v2056_v60 = vpop.permute.xlu0 %2055 }
0x1231   :  { %v2058_v61 = vadd.f32 %v2056_v60, %v1969_v15  ;;  %v3202_v15 = vpack.c.bf16 %v2307_v48, %v2306_v47 }
0x1233   :  { %3330 = vtanh.f32 %v2058_v61  ;;  %3203 = vmatprep.subr.bf16.mxu0 %v3202_v15 }
0x1234   :  { %v1957_v62 = vpop.permute.xlu1 %1956 }
0x1235   :  { %v1959_v63 = vadd.f32 %v1957_v62, %v1870_v16  ;;  %v2309_v16 = vld [vmem:[%s3970_s13 + $0x18] sm:$0xff] }
0x1236   :  { %v3206_v49 = vpack.c.bf16 %v2309_v16, %v2308_v33 }
0x1237   :  { %3332 = vtanh.f32 %v1959_v63  ;;  %v2296_v63 = vld [vmem:[%s3969_s12 + $0x10] sm:$0xff] }
0x123d   :  { %v3331_v0 = vpop.eup %3330 }
0x123e   :  { %2062 = vrot.lane.b32.xlu0 %v3331_v0, %s3374_s5  ;;  %v2297_v0 = vld [vmem:[%s3969_s12 + $0x18] sm:$0xff] }
0x1241   :  { %v3333_v1 = vpop.eup %3332 }
0x1242   :  { %1963 = vrot.lane.b32.xlu1 %v3333_v1, %s3374_s5 }
0x12b0   :  { %v2063_v3 = vpop.permute.xlu0 %2062 }
0x12b1   :  { %v2065_v5 = vmul.f32 %v2063_v3, %v2060_v2  ;;  %v3214_v2 = vpack.c.bf16 %v2297_v0, %v2296_v63 }
0x12b3   :  { %v3875_v6 = vadd.f32 %v2066_v4, %v2065_v5  ;;  %v2300_v4 = vld [vmem:[#allocation5 + $0x10] sm:$0xff]  ;;  %v2301_v5 = vld [vmem:[#allocation5 + $0x18] sm:$0xff] }
0x12b4   :  { %v1964_v8 = vpop.permute.xlu1 %1963 }
0x12b5   :  { %v1966_v10 = vmul.f32 %v1964_v8, %v1961_v7  ;;  %2074 = vrot.lane.b32.xlu0 %v3875_v6, %s3374_s5  ;;  %v2303_v7 = vld [vmem:[#allocation5 + $0x28] sm:$0xff]  ;;  %v2304_v8 = vld [vmem:[#allocation5 + $0x30] sm:$0xff] }
0x12b7   :  { %v3880_v11 = vadd.f32 %v1967_v9, %v1966_v10  ;;  %v2305_v9 = vld [vmem:[#allocation5 + $0x38] sm:$0xff]  ;;  %v2286_v10 = vld [vmem:[#allocation4] sm:$0xff] }
0x12b9   :  { %2069 = vrot.lane.b32.xlu1 %v3880_v11, %s3374_s5 }
0x1327   :  { %v2075_v12 = vpop.permute.xlu0 %2074 }
0x1328   :  { %2077 = vst.msk [vmem:[#allocation5 + $0x8] sm:$0xff] %vm623_vm4, %v2075_v12  ;;  %3064 = vmatmul.mubr.msk.f32.vlgmr.msra.gmra.mrb[30].mxu1 %vm623_vm4, %v2075_v12  ;;  %v2288_v12 = vld [vmem:[#allocation4 + $0x10] sm:$0xff] }
0x132b   :  { %v2070_v13 = vpop.permute.xlu1 %2069 }
0x132c   :  { %2072 = vst.msk [vmem:[#allocation4 + $0x30] sm:$0xff] %vm623_vm4, %v2070_v13  ;;  %3053 = vmatmul.mubr.msk.f32.vlgmr.msra.gmra.mrb[22].mxu0 %vm623_vm4, %v2070_v13  ;;  %v2289_v13 = vld [vmem:[#allocation4 + $0x18] sm:$0xff] }
0x132d   :  { %3205 = vmatpush3.bf16.msra.mxu0 %v3202_v15 }
0x132e   :  { %3207 = vmatprep.subr.bf16.mxu0 %v3206_v49 }
0x132f   :  { %v2299_v3 = vld [vmem:[#allocation5 + $0x8] sm:$0xff] }
0x1331   :  { %3209 = vmatpush3.bf16.msra.mxu0 %v3206_v49 }
0x1332   :  { %3211 = vmatprep.subr.bf16.mxu0 %v3210_v54 }
0x13fb   :  { %v2246_v14 = vpop.f32.mrb[30].mxu1 }
0x13fc   :  { %v2247_v17 = vadd.f32 %v3657_v25, %v2246_v14  ;;  %v3065_v18 = vpop.f32.mrb[31].mxu1  ;;  %v2290_v14 = vld [vmem:[#allocation4 + $0x20] sm:$0xff] }
0x13fd   :  { %v2292_v18 = vld [vmem:[#allocation4 + $0x30] sm:$0xff] }
0x13fe   :  { %2258 = vrot.lane.b32.xlu0 %v2247_v17, %s3373_s21  ;;  %v2250_v23 = vadd.f32 %v2247_v17, %v2177_v22  ;;  %v2291_v17 = vld [vmem:[#allocation4 + $0x28] sm:$0xff] }
0x13ff   :  { %v2147_v19 = vpop.f32.mrb[22].mxu0 }
0x1400   :  { %v2148_v20 = vadd.f32 %v3665_v31, %v2147_v19  ;;  %v3054_v21 = vpop.f32.mrb[23].mxu0  ;;  %v2676_v28 = vmul.f32 -1.442695, %v2250_v23 }
0x1402   :  { %2159 = vrot.lane.b32.xlu1 %v2148_v20, %s3373_s21  ;;  %v2151_v29 = vadd.f32 %v2148_v20, %v2078_v26  ;;  %3334 = vpow2.f32 %v2676_v28  ;;  %v2693_v20 = vld [vmem:[%s3971_s14] ss:$0 sm:$0xff]  ;;  %s3346_s14 = scalar_lea.vmem %s2597_s11, 1024 }
0x1403   :  { %p3347_p0 = scmp.ne.s32.totalorder %s2597_s11, %s3346_s14  ;;  %p3352_p2 = scmp.lt.s32.totalorder %s3346_s14, %s3346_s14 }
0x1404   :  { %v2674_v32 = vmul.f32 -1.442695, %v2151_v29 }
0x1405   :  { %p3353_p3 = por %p3352_p2, %p3351_p1 }
0x1406   :  { %3336 = vpow2.f32 %v2674_v32 }
0x1407   :  { %p3354_p4 = pnand %p3353_p3, %p3347_p0 }
0x140c   :  { %v3335_v34 = vpop.eup %3334 }
0x140d   :  { %v2254_v35 = vadd.f32 1.0, %v3335_v34 }
0x140f   :  { %3338 = vrcp.f32 %v2254_v35 }
0x1410   :  { %v3337_v25 = vpop.eup %3336 }
0x1411   :  { %v2155_v36 = vadd.f32 1.0, %v3337_v25 }
0x1413   :  { %3340 = vrcp.f32 %v2155_v36 }
0x1419   :  { %v3339_v37 = vpop.eup %3338 }
0x141a   :  { %v2268_v50 = vsub.f32 1.0, %v3339_v37  ;;  %v2274_v24 = vmul.f32 %v3339_v37, %v3875_v6  ;;  %v2302_v6 = vld [vmem:[#allocation5 + $0x20] sm:$0xff] }
0x141d   :  { %v3341_v39 = vpop.eup %3340 }
0x141e   :  { %v2169_v56 = vsub.f32 1.0, %v3341_v39  ;;  %v2175_v58 = vmul.f32 %v3341_v39, %v3880_v11  ;;  %v2287_v11 = vld [vmem:[#allocation4 + $0x8] sm:$0xff] }
0x1470   :  { %v2259_v38 = vpop.permute.xlu0 %2258 }
0x1471   :  { %v2261_v31 = vmul.f32 %v3339_v37, %v2259_v38 }
0x1473   :  { %2263 = vrot.lane.b32.xlu0 %v2261_v31, %s3373_s21 }
0x1474   :  { %v2160_v40 = vpop.permute.xlu1 %2159 }
0x1475   :  { %v2162_v41 = vmul.f32 %v3341_v39, %v2160_v40 }
0x1477   :  { %2164 = vrot.lane.b32.xlu1 %v2162_v41, %s3373_s21 }
0x14e5   :  { %v2264_v42 = vpop.permute.xlu0 %2263 }
0x14e6   :  { %v2266_v43 = vadd.f32 %v2264_v42, %v2177_v22 }
0x14e8   :  { %3342 = vtanh.f32 %v2266_v43 }
0x14e9   :  { %v2165_v30 = vpop.permute.xlu1 %2164 }
0x14ea   :  { %v2167_v44 = vadd.f32 %v2165_v30, %v2078_v26 }
0x14ec   :  { %3344 = vtanh.f32 %v2167_v44 }
0x14f2   :  { %v3343_v45 = vpop.eup %3342 }
0x14f3   :  { %2270 = vrot.lane.b32.xlu0 %v3343_v45, %s3374_s5 }
0x14f6   :  { %v3345_v46 = vpop.eup %3344 }
0x14f7   :  { %2171 = vrot.lane.b32.xlu1 %v3345_v46, %s3374_s5 }
0x1565   :  { %v2271_v27 = vpop.permute.xlu0 %2270 }
0x1566   :  { %v2273_v51 = vmul.f32 %v2271_v27, %v2268_v50 }
0x1568   :  { %v2275_v55 = vadd.f32 %v2274_v24, %v2273_v51 }
0x1569   :  { %v2172_v57 = vpop.permute.xlu1 %2171 }
0x156a   :  { %v2174_v59 = vmul.f32 %v2172_v57, %v2169_v56  ;;  %2282 = vrot.lane.b32.xlu0 %v2275_v55, %s3374_s5 }
0x156c   :  { %v2176_v60 = vadd.f32 %v2175_v58, %v2174_v59 }
0x156e   :  { %2277 = vrot.lane.b32.xlu1 %v2176_v60, %s3374_s5 }
0x15dc   :  { %v2283_v61 = vpop.permute.xlu0 %2282 }
0x15dd   :  { %2285 = vst.msk [vmem:[#allocation5] sm:$0xff] %vm623_vm4, %v2283_v61 }
0x15e0   :  { %v2278_v62 = vpop.permute.xlu1 %2277 }
0x15e1   :  { %2280 = vst.msk [vmem:[#allocation4 + $0x38] sm:$0xff] %vm623_vm4, %v2278_v62 }
0x15e4   :  { %v2298_v1 = vld [vmem:[#allocation5] sm:$0xff] }
0x15e5   :  { %3074 = vmatprep.mubr.msk.f32.mxu0 %vm623_vm4, %v2298_v1 }
0x15e6   :  { %3075 = vmatmul.mubr.msk.f32.vlgmr.msra.gmra.mrb[24].mxu0 %vm623_vm4, %v2299_v3 }
0x15e7   :  { %3077 = vmatprep.mubr.msk.f32.mxu0 %vm623_vm4, %v2300_v4  ;;  %3213 = vmatpush3.bf16.msra.mxu0 %v3210_v54 }
0x15e8   :  { %3215 = vmatprep.subr.bf16.mxu0 %v3214_v2  ;;  %v2293_v19 = vld [vmem:[#allocation4 + $0x38] sm:$0xff] }
0x15ea   :  { %3078 = vmatmul.mubr.msk.f32.gmra.mrb[26].mxu0 %vm623_vm4, %v2301_v5 }
0x15eb   :  { %3080 = vmatprep.mubr.msk.f32.mxu0 %vm623_vm4, %v2302_v6  ;;  %3217 = vmatpush3.bf16.msra.mxu0 %v3214_v2 }
0x15ee   :  { %3081 = vmatmul.mubr.msk.f32.gmra.mrb[28].mxu0 %vm623_vm4, %v2303_v7 }
0x15ef   :  { %3083 = vmatprep.mubr.msk.f32.mxu0 %vm623_vm4, %v2304_v8 }
0x15f2   :  { %3084 = vmatmul.mubr.msk.f32.gmra.mrb[30].mxu0 %vm623_vm4, %v2305_v9 }
0x15f3   :  { %3094 = vmatprep.mubr.msk.f32.mxu0 %vm623_vm4, %v2286_v10 }
0x15f6   :  { %3095 = vmatmul.mubr.msk.f32.vlgmr.msra.gmra.mrb[24].mxu0 %vm623_vm4, %v2287_v11 }
0x15f7   :  { %3097 = vmatprep.mubr.msk.f32.mxu0 %vm623_vm4, %v2288_v12 }
0x15fa   :  { %3098 = vmatmul.mubr.msk.f32.gmra.mrb[26].mxu0 %vm623_vm4, %v2289_v13 }
0x15fb   :  { %3100 = vmatprep.mubr.msk.f32.mxu0 %vm623_vm4, %v2290_v14 }
0x15fe   :  { %3101 = vmatmul.mubr.msk.f32.gmra.mrb[28].mxu0 %vm623_vm4, %v2291_v17 }
0x15ff   :  { %3103 = vmatprep.mubr.msk.f32.mxu0 %vm623_vm4, %v2292_v18 }
0x1602   :  { %3104 = vmatmul.mubr.msk.f32.gmra.mrb[30].mxu0 %vm623_vm4, %v2293_v19 }
0x16c9   :  { %v3096_v21 = vpop.f32.mrb[24].mxu0 }
0x16ca   :  { %v2576_v22 = vadd.f32 %v3096_v21, %v2693_v20  ;;  %v2529_v23 = vpop.f32.mrb[25].mxu0 }
0x16cb   :  { %v2575_v26 = vadd.f32 %v2693_v20, %v2529_v23 }
0x16cc   :  { %2584 = vst [vmem:[#allocation6 + $0x8] sm:$0xff] %v2576_v22 }
0x16cd   :  { %2583 = vst [vmem:[#allocation6] sm:$0xff] %v2575_v26  ;;  %v3099_v28 = vpop.f32.mrb[26].mxu0 }
0x16ce   :  { %v2578_v29 = vadd.f32 %v3099_v28, %v2693_v20  ;;  %v2539_v32 = vpop.f32.mrb[27].mxu0 }
0x16cf   :  { %v2577_v34 = vadd.f32 %v2693_v20, %v2539_v32 }
0x16d0   :  { %2586 = vst [vmem:[#allocation6 + $0x18] sm:$0xff] %v2578_v29 }
0x16d1   :  { %2585 = vst [vmem:[#allocation6 + $0x10] sm:$0xff] %v2577_v34  ;;  %v3102_v35 = vpop.f32.mrb[28].mxu0 }
0x16d2   :  { %v2580_v25 = vadd.f32 %v3102_v35, %v2693_v20  ;;  %v2549_v36 = vpop.f32.mrb[29].mxu0 }
0x16d3   :  { %v2579_v37 = vadd.f32 %v2693_v20, %v2549_v36 }
0x16d4   :  { %2588 = vst [vmem:[#allocation6 + $0x28] sm:$0xff] %v2580_v25 }
0x16d5   :  { %2587 = vst [vmem:[#allocation6 + $0x20] sm:$0xff] %v2579_v37  ;;  %v3105_v38 = vpop.f32.mrb[30].mxu0 }
0x16d6   :  { %v2582_v31 = vadd.f32 %v3105_v38, %v2693_v20  ;;  %v2559_v39 = vpop.f32.mrb[31].mxu0 }
0x16d7   :  { %v2581_v40 = vadd.f32 %v2693_v20, %v2559_v39 }
0x16d8   :  { %2590 = vst [vmem:[#allocation6 + $0x38] sm:$0xff] %v2582_v31 }
0x16d9   :  { %2589 = vst [vmem:[#allocation6 + $0x30] sm:$0xff] %v2581_v40 }
0x16da   :  { %3357 = shalt.err (!%p3354_p4)
}
0x16db   :  { %s3358_s18 = scalar_lea.hbm %s3972_s15, 1024 }
0x16dc   :  { %p3359_p5 = scmp.ne.s32.totalorder %s3972_s15, %s3358_s18  ;;  %p3362_p6 = scmp.lt.u32.totalorder %s3358_s18, %s3972_s15 }
0x16de   :  { %p3364_p7 = pnand %p3362_p6, %p3359_p5 }
0x16e0   :  { %3367 = shalt.err (!%p3364_p7)
}
0x16e1   :  { %s3376_s21 = smov 128   ;;  %s3377_s5 = smov 8  }
0x16e2   :  { %2602 = dma.vmem_to_hbm [thread:$0]  %s2597_s11, 1024, %s3972_s15, [#allocation7], %s3376_s21, %s3376_s21, %s3377_s5  }
0x16e3   :  { %3368 = dma.done.wait [#allocation7], 1024  }
0x16e4   :  { %3369 = vsyncadd [#allocation7], 4294966272 }
0x16e5   :  { %2606 = vsyncpa [#allocation7], 1 }

</bundles_post_ra>
